<compile_context>
chip_gen: v5e
topology: v5e:2x2
jax: 0.10.0
libtpu: 0.0.40
codegen_flags: <defaults>
</compile_context>

<pallas_src>
import functools

import jax
import jax.numpy as jnp
from jax.experimental import pallas as pl
from jax.experimental.pallas import tpu as pltpu


def _round_up(x, m):
    return ((x + m - 1) // m) * m


def _cdiv(a, b):
    return -(-a // b)


def _vmem_budget():
    """Return (live-tile budget bytes, vmem_limit_bytes) for this TPU generation."""
    cap = None
    try:
        cap = getattr(pltpu.get_tpu_info(), "vmem_capacity_bytes", None)
    except Exception:
        cap = None
    if cap is not None and cap >= (100 << 20):   # v5e / v6e: 128 MiB physical VMEM
        return 64 << 20, 100 << 20
    if cap is not None and cap > 0:              # v7x: 64 MiB physical VMEM
        return 36 << 20, 48 << 20
    return 32 << 20, 48 << 20                    # unknown chip: safe everywhere


def _balanced_tile(extent, cap, align):
    """Largest tile <= cap (multiple of `align`) minimizing padding.

    Returns (tile, padded_extent) with padded_extent = tile * num_blocks.
    """
    ext = _round_up(max(extent, align), align)
    nblocks = _cdiv(ext, cap)
    tile = _round_up(_cdiv(ext, nblocks), align)
    return tile, tile * nblocks


def _choose_tiles(M, K, N, budget_bytes):
    """Pick (tm, tk, tn) and padded extents for f32 operands (sublane align 8)."""
    cap_m, cap_k, cap_n = 512, 2048, 512
    collapse_n = _round_up(N, 128) <= 1024       # whole N in one lane-dense block

    while True:
        tm, M_pad = _balanced_tile(M, cap_m, 8)
        tk, K_pad = _balanced_tile(K, cap_k, 128)
        if collapse_n:
            tn = N_pad = _round_up(N, 128)
        else:
            tn, N_pad = _balanced_tile(N, cap_n, 128)
        # double-buffered f32 inputs + double-buffered f32 output block
        foot = 2 * 4 * (tm * tk + tk * tn) + 2 * 4 * (tm * tn)
        if foot <= budget_bytes:
            break
        if cap_k > 512:                          # shrink K first: only adds grid steps
            cap_k //= 2
        elif collapse_n and _round_up(N, 128) > 512:
            collapse_n = False                   # give up on a single N block
        elif cap_m > 128:
            cap_m //= 2
        elif cap_n > 128:
            cap_n //= 2
        else:
            break                                # smallest legal config

    # v7x has 2 TensorCores: make sure at least one parallel axis has >=2 blocks.
    if (M_pad // tm) * (N_pad // tn) == 1 and tm >= 256:
        tm = _round_up(_cdiv(_round_up(M, 8), 2), 8)
        M_pad = 2 * tm

    return tm, tk, tn, M_pad, K_pad, N_pad


def _matmul_kernel(x_ref, w_ref, o_ref):
    """z = x @ W tiled over (M, N, K); K innermost.

    The f32 output block is resident in VMEM across the K axis (its block index
    does not depend on k), so it doubles as the accumulator - no scratch needed.
    """
    k = pl.program_id(2)

    @pl.when(k == 0)
    def _():
        o_ref[...] = jnp.zeros_like(o_ref)

    o_ref[...] += jnp.dot(x_ref[...], w_ref[...],
                          preferred_element_type=jnp.float32)


def _eval_kernel(x_ref, w_ref, o_ref, *, n_valid):
    """A = one_hot(argmax(x @ W, -1)).

    N is a single lane-dense block so the argmax is global; padded columns
    (>= n_valid) are masked to -inf.  The resident f32 output block is used as
    the K-axis accumulator and converted to the one-hot in-place at the end.
    """
    k = pl.program_id(1)

    @pl.when(k == 0)
    def _():
        o_ref[...] = jnp.zeros_like(o_ref)

    o_ref[...] += jnp.dot(x_ref[...], w_ref[...],
                          preferred_element_type=jnp.float32)

    @pl.when(k == pl.num_programs(1) - 1)
    def _():
        z = o_ref[...]                                          # (tm, N_pad) f32
        col = jax.lax.broadcasted_iota(jnp.int32, z.shape, 1)   # column ids
        z = jnp.where(col < n_valid, z, -jnp.inf)               # mask padding
        idx = jnp.argmax(z, axis=-1, keepdims=True).astype(jnp.int32)
        o_ref[...] = jnp.where(col == idx, 1.0, 0.0).astype(o_ref.dtype)


def linear_network_forward(x, weights, training=True):
    """Pallas implementation of LinearNetwork.forward.

    x:       (batch, input_size)
    weights: (input_size, output_size)
    returns: (batch, output_size) float32
    """
    # torch semantics: input = x.float(); weights is an f32 nn.Parameter.
    x = x.astype(jnp.float32)
    weights = weights.astype(jnp.float32)

    M, K = x.shape
    Kw, N = weights.shape
    assert K == Kw, "x / weights inner dimensions must match"

    # Tiny problems: pallas_call is pure launch + pad/slice overhead; XLA fusion wins.
    if M * K * N < (1 << 21):
        z = jnp.dot(x, weights, preferred_element_type=jnp.float32)
        if training:
            return z
        return jax.nn.one_hot(jnp.argmax(z, axis=-1), N, dtype=jnp.float32)

    budget, vmem_limit = _vmem_budget()
    tm, tk, tn, M_pad, K_pad, N_pad = _choose_tiles(M, K, N, budget)

    # Pad only when needed (jnp.pad is an extra HBM round-trip).
    x_p = x if (M_pad == M and K_pad == K) else jnp.pad(
        x, ((0, M_pad - M), (0, K_pad - K)))
    w_p = weights if (K_pad == K and N_pad == N) else jnp.pad(
        weights, ((0, K_pad - K), (0, N_pad - N)))

    cost = pl.CostEstimate(
        flops=2 * M_pad * K_pad * N_pad,
        transcendentals=0,
        bytes_accessed=4 * (M_pad * K_pad + K_pad * N_pad + M_pad * N_pad))

    # Fused eval (matmul + global argmax + one-hot) only when all of N fits one block.
    eval_foot = 2 * 4 * (tm * tk + tk * N_pad + tm * N_pad)
    fused_eval = (not training) and (tn == N_pad) and (eval_foot <= budget)

    if training or not fused_eval:
        z = pl.pallas_call(
            _matmul_kernel,
            out_shape=jax.ShapeDtypeStruct((M_pad, N_pad), jnp.float32),
            grid_spec=pltpu.PrefetchScalarGridSpec(
                num_scalar_prefetch=0,
                grid=(M_pad // tm, N_pad // tn, K_pad // tk),
                in_specs=[
                    pl.BlockSpec((tm, tk), lambda i, j, k: (i, k)),
                    pl.BlockSpec((tk, tn), lambda i, j, k: (k, j)),
                ],
                out_specs=pl.BlockSpec((tm, tn), lambda i, j, k: (i, j)),
            ),
            compiler_params=pltpu.CompilerParams(
                dimension_semantics=("parallel", "parallel", "arbitrary"),
                vmem_limit_bytes=vmem_limit,
            ),
            cost_estimate=cost,
        )(x_p, w_p)
        if training:
            return z[:M, :N]
        # Large-N eval: scalable path = tiled Pallas matmul + XLA argmax/one-hot.
        # TODO(synk): replace with an online running-max/argmax Pallas pass if
        # huge output_size ever becomes the common case.
        zz = z[:M, :N]
        return jax.nn.one_hot(jnp.argmax(zz, axis=-1), N, dtype=jnp.float32)

    kernel = functools.partial(_eval_kernel, n_valid=N)
    out = pl.pallas_call(
        kernel,
        out_shape=jax.ShapeDtypeStruct((M_pad, N_pad), jnp.float32),
        grid_spec=pltpu.PrefetchScalarGridSpec(
            num_scalar_prefetch=0,
            grid=(M_pad // tm, K_pad // tk),
            in_specs=[
                pl.BlockSpec((tm, tk), lambda i, k: (i, k)),
                pl.BlockSpec((tk, N_pad), lambda i, k: (k, 0)),
            ],
            out_specs=pl.BlockSpec((tm, N_pad), lambda i, k: (i, 0)),
        ),
        compiler_params=pltpu.CompilerParams(
            dimension_semantics=("parallel", "arbitrary"),
            vmem_limit_bytes=vmem_limit,
        ),
        cost_estimate=cost,
    )(x_p, w_p)
    return out[:M, :N]


if __name__ == "__main__":
    key = jax.random.PRNGKey(0)
    k_x0, k_w0, k_x1, k_w1 = jax.random.split(key, 4)

    # --- Case 1: toy module size (8, 32, 16) -> jnp short-circuit path.
    b0, i0, o0 = 8, 32, 16
    x0 = jax.random.normal(k_x0, (b0, i0), dtype=jnp.float32)
    w0 = jax.random.normal(k_w0, (i0, o0), dtype=jnp.float32)
    z0 = jax.block_until_ready(linear_network_forward(x0, w0, training=True))
    a0 = jax.block_until_ready(linear_network_forward(x0, w0, training=False))
    z0_ref = x0 @ w0
    assert z0.shape == (b0, o0) and a0.shape == (b0, o0)
    assert bool(jnp.allclose(z0, z0_ref, atol=1e-4, rtol=1e-4))
    assert bool(jnp.all(jnp.sum(a0, axis=-1) == 1.0))
    assert bool(jnp.all(jnp.argmax(a0, axis=-1) == jnp.argmax(z0_ref, axis=-1)))

    # --- Case 2: big enough to exercise the Pallas path
    #     (2 M blocks for the two v7x TCs, 2 K steps of accumulation, no padding).
    b1, i1, o1 = 256, 4096, 128
    x1 = jax.random.normal(k_x1, (b1, i1), dtype=jnp.float32)
    w1 = jax.random.normal(k_w1, (i1, o1), dtype=jnp.float32)
    z1 = jax.block_until_ready(linear_network_forward(x1, w1, training=True))
    a1 = jax.block_until_ready(linear_network_forward(x1, w1, training=False))
    z1_ref = x1 @ w1
    assert z1.shape == (b1, o1) and a1.shape == (b1, o1)
    assert bool(jnp.allclose(z1, z1_ref, atol=1e-2, rtol=1e-2))
    assert bool(jnp.all(jnp.sum(a1, axis=-1) == 1.0))
    assert bool(jnp.all(jnp.argmax(a1, axis=-1) == jnp.argmax(z1, axis=-1)))

    print("KERNEL_OK")
</pallas_src>

<mosaic_0001>
module attributes {stable_mosaic.version = 11 : i64} {
  func.func @_matmul_kernel(%arg0: i32, %arg1: i32, %arg2: i32, %arg3: memref<128x2048xf32, #tpu.memory_space<vmem>>, %arg4: memref<2048x128xf32, #tpu.memory_space<vmem>>, %arg5: memref<128x128xf32, #tpu.memory_space<vmem>>) attributes {dimension_semantics = [#tpu.dimension_semantics<parallel>, #tpu.dimension_semantics<parallel>, #tpu.dimension_semantics<arbitrary>], iteration_bounds = array<i64: 2, 1, 2>, scalar_prefetch = 0 : i64, scratch_operands = 0 : i64, tpu.core_type = #tpu.core_type<tc>, window_params = [{transform_indices = @transform_0, window_bounds = array<i64: 128, 2048>}, {transform_indices = @transform_1, window_bounds = array<i64: 2048, 128>}, {transform_indices = @transform_2, window_bounds = array<i64: 128, 128>}]} {
    %c0_i32 = arith.constant 0 : i32
    %0 = arith.cmpi eq, %arg2, %c0_i32 : i32
    %1 = arith.extui %0 : i1 to i32
    %c0_i32_0 = arith.constant 0 : i32
    %2 = arith.cmpi ne, %1, %c0_i32_0 : i32
    scf.if %2 {
      %cst_8 = arith.constant 0.000000e+00 : f32
      %9 = vector.broadcast %cst_8 : f32 to vector<128x128xf32>
      %c0_9 = arith.constant 0 : index
      %c0_10 = arith.constant 0 : index
      %10 = vector.load %arg5[%c0_9, %c0_10] : memref<128x128xf32, #tpu.memory_space<vmem>>, vector<128x128xf32>
      tpu.vector_store %arg5[%c0_9, %c0_10], %9 {strides = array<i32>} : memref<128x128xf32, #tpu.memory_space<vmem>>, vector<128x128xf32>,
    } else {
    }
    %c0 = arith.constant 0 : index
    %c0_1 = arith.constant 0 : index
    %3 = vector.load %arg5[%c0, %c0_1] : memref<128x128xf32, #tpu.memory_space<vmem>>, vector<128x128xf32>
    %c0_2 = arith.constant 0 : index
    %c0_3 = arith.constant 0 : index
    %4 = vector.load %arg3[%c0_2, %c0_3] : memref<128x2048xf32, #tpu.memory_space<vmem>>, vector<128x2048xf32>
    %c0_4 = arith.constant 0 : index
    %c0_5 = arith.constant 0 : index
    %5 = vector.load %arg4[%c0_4, %c0_5] : memref<2048x128xf32, #tpu.memory_space<vmem>>, vector<2048x128xf32>
    %cst = arith.constant dense<0.000000e+00> : vector<128x128xf32>
    %6 = tpu.matmul %4, %5, %cst {dimension_numbers = #tpu.dot_dimension_numbers<[1], [0], [0], [1], [0, 0, 1, 1], [], []>} : vector<128x2048xf32>, vector<2048x128xf32>, vector<128x128xf32> -> vector<128x128xf32>
    %7 = arith.addf %3, %6 : vector<128x128xf32>
    %c0_6 = arith.constant 0 : index
    %c0_7 = arith.constant 0 : index
    %8 = vector.load %arg5[%c0_6, %c0_7] : memref<128x128xf32, #tpu.memory_space<vmem>>, vector<128x128xf32>
    tpu.vector_store %arg5[%c0_6, %c0_7], %7 {strides = array<i32>} : memref<128x128xf32, #tpu.memory_space<vmem>>, vector<128x128xf32>,
    return
  }
  func.func @transform_0(%arg0: i32, %arg1: i32, %arg2: i32) -> (i32, i32) {
    %c0_i32 = arith.constant 0 : i32
    return %arg0, %arg2 : i32, i32
  }
  func.func @transform_1(%arg0: i32, %arg1: i32, %arg2: i32) -> (i32, i32) {
    %c0_i32 = arith.constant 0 : i32
    return %arg2, %arg1 : i32, i32
  }
  func.func @transform_2(%arg0: i32, %arg1: i32, %arg2: i32) -> (i32, i32) {
    %c0_i32 = arith.constant 0 : i32
    return %arg0, %arg1 : i32, i32
  }
}

</mosaic_0001>

<bundles_post_ra>
// kernel: tpu_custom_call.1
= control target key start
LH: loop header
LB: loop body
LE: loop exit
PB: predicated region body
PF: predicated region fallthrough
CT: control target
= control target key end

     0   :  { %s3357_s0 = inlined_call_operand.hbm [shape: f32[256,4096], index: 0, kind: input, shape index: {}]   ;;  %s3358_s1 = inlined_call_operand.hbm [shape: f32[4096,128], index: 1, kind: input, shape index: {}]   ;;  %s3359_s2 = inlined_call_operand.hbm [shape: f32[256,128], index: 2, kind: output, shape index: {}]  }
   0x1   :  { %3366 = sst [smem:[#allocation16_spill]] %s3357_s0 }
   0x2   :  { %3367 = sst [smem:[#allocation17_spill]] %s3359_s2 }
   0x3   :  { %7 = vsyncpa [#allocation3], 0 }
   0x4   :  { %9 = vsyncpa [#allocation3 + $0x1], 0 }
   0x5   :  { %10 = vsyncpa [#allocation6], 0 }
   0x6   :  { %12 = vsyncpa [#allocation6 + $0x1], 0 }
   0x7   :  { %13 = vsyncpa [#allocation4], 0 }
   0x8   :  { %15 = vsyncpa [#allocation4 + $0x1], 0  ;;  %s2390_s9 = smov 0   ;;  %s2392_s10 = smov 0  }
   0x9   :  { %s2394_s11 = smov 0   ;;  %s2396_s12 = smov 0  }
   0xa   :  { %s2398_s13 = smov 0   ;;  %s2400_s14 = smov 0  }
   0xb   :  { %s2402_s15 = smov 0   ;;  %s2404_s16 = smov 0  }
   0xc   :  { %s2406_s17 = smov 0   ;;  %s2408_s18 = smov 0  }
   0xd   :  { %s2410_s19 = smov 0   ;;  %s2412_s20 = smov 0  }
   0xe   :  { %s2414_s21 = smov 0   ;;  %s2416_s22 = smov 0  }
   0xf LB: > { %3368 = sst [smem:[#allocation11_spill]] %s2350_s18  ;;  %s33_s23 = sadd.s32 1, %s2358_s20  ;;  %s2366_s22 = sphi %s2416_s22, %s21_s22   ;;  %s2362_s21 = sphi %s2414_s21, %s3389_s21   ;;  %s2358_s20 = sphi %s2412_s20, %s3402_s20   ;;  %s2354_s19 = sphi %s2410_s19, %s3401_s19   ;;  %s2350_s18 = sphi %s2408_s18, %s3400_s18   ;;  %s2346_s17 = sphi %s2406_s17, %s3399_s17   ;;  %s2342_s16 = sphi %s2404_s16, %s3398_s16   ;;  %s2338_s15 = sphi %s2402_s15, %s3397_s15   ;;  %s2334_s14 = sphi %s2400_s14, %s3396_s14   ;;  %s2330_s13 = sphi %s2398_s13, %s3395_s13   ;;  %s2326_s12 = sphi %s2396_s12, %s3394_s12   ;;  %s2322_s11 = sphi %s2394_s11, %s3393_s11   ;;  %s2318_s10 = sphi %s2392_s10, %s3392_s10   ;;  %s2314_s9 = sphi %s2390_s9, %s3391_s9  }
  0x10   : > { %3369 = sst [smem:[#allocation12_spill]] %s2354_s19  ;;  %s40_s24 = sadd.s32 1, %s2362_s21 }
  0x11   : > { %3370 = sst [smem:[#allocation13_spill]] %s2362_s21  ;;  %p34_p0 = scmp.ge.s32.totalorder %s33_s23, 2 }
  0x12   : > { %s49_s25 = sadd.s32 1, %s2346_s17  ;;  %p56_p1 = scmp.ne.s32.totalorder %s2346_s17, %s2342_s16 }
  0x13   : > { %p57_p2 = scmp.eq.s32.totalorder %s2366_s22, 0  ;;  %s3404_s23 = smov (%p34_p0, %s33_s23), 0 }
  0x14   : > { %3371 = sst [smem:[#allocation14_spill]] %s3404_s23  ;;  %s3406_s24 = smov (!%p34_p0, %s40_s24), %s2362_s21 }
  0x15   : > { %s2471_s26 = ssub.s32 %s2358_s20, %s3404_s23  ;;  %p2475_p3 = por %p57_p2, %p56_p1 }
  0x16   : > { %p42_p4 = scmp.ge.s32.totalorder %s3406_s24, 2  ;;  %p62_p5 = scmp.ne.s32.totalorder %s2342_s16, %s2338_s15 }
  0x17   : > { %s105_s28 = sadd.s32 1, %s2322_s11  ;;  %p3362_p6 = scmp.lt.s32.totalorder %s2366_s22, 4 }
  0x18   : > { %s3408_s24 = smov (%p42_p4, %s3406_s24), 0  ;;  %s142_s29 = sand.u32 1, %s2346_s17  }
  0x19   : > { %3373 = sst [smem:[#allocation15_spill]] %s3408_s24  ;;  %s44_s30 = ssub.s32 %s2362_s21, %s3408_s24 }
  0x1a   : > { %s46_s3 = sor.u32 %s2471_s26, %s44_s30  ;;  %p103_p7 = scmp.eq.s32.totalorder %s44_s30, 0 }
  0x1b   : > { %p47_p8 = scmp.eq.s32.totalorder %s46_s3, 0  ;;  %s1997_s4 = sshll.u32 %s142_s29, 11 }
  0x1c   : > { %s2490_s5 = scalar_select %p103_p7, %s2322_s11, %s105_s28  }
  0x1d   : > { %s2493_s6 = scalar_select %p47_p8, %s2346_s17, %s49_s25  }
  0x1e   : > { %s1999_s7 = sshll.u32 %s2358_s20, 4  ;;  %s2015_s8 = sshll.u32 %s2362_s21, 9 }
  0x1f   : > { %s146_s23 = scalar_lea.vmem [#allocation2], %s1997_s4  ;;  %s152_s19 = sadd.s32 %s2015_s8, %s1999_s7 }
  0x20   : > { %s157_s2 = sshll.u32 %s146_s23, 4  ;;  %s2001_s18 = sshll.u32 %s152_s19, 3  ;;  %s158_s2 = int_to_ptr.vmem [resolvable:$true] %s157_s2 }
  0x21   : > { %p2025_p9 = pnand %p3362_p6, %p2475_p3  ;;  %s3374_s0 = sld [smem:[#allocation16_spill]] }
  0x22   : > { %p2005_p10 = scmp.ge.s32.totalorder %s2366_s22, 1  ;;  %s143_s19 = scalar_lea.sflag [#allocation3], %s142_s29 }
  0x23   : > { %s2368_s23 = smov 4096   ;;  %s2369_s27 = smov 2048  }
  0x24   : > { %s3363_s4 = smov 128   ;;  %p188_p11 = scmp.lt.s32.totalorder %s2366_s22, 5 }
  0x25   : > { %s1993_s7 = sadd.s32 4294967295, %s2366_s22   ;;  %s1994_s8 = sadd.s32 4294967294, %s2366_s22  }
  0x26   : > { %p2507_p12 = pnand %p2005_p10, %p188_p11  ;;  %p63_p13 = scmp.eq.s32.totalorder %s1993_s7, 0 }
  0x27   : > { %s154_s25 = scalar_lea.hbm %s3374_s0, %s2001_s18  ;;  %p75_p0 = scmp.eq.s32.totalorder %s2471_s26, 0 }
  0x28   : > { %s155_s28 = sshll.u32 %s154_s25, 4  ;;  %s77_s29 = sadd.s32 1, %s2334_s14  ;;  %s156_s28 = int_to_ptr.hbm [resolvable:$true] %s155_s28 }
  0x29   : > { %2027 = dma.hbm_to_vmem [thread:$0]  (!%p2025_p9), %s156_s28, 32768, %s158_s2, %s143_s19, %s2368_s23, %s2369_s27, %s3363_s4  }
  0x2a   : > { %p84_p1 = scmp.ne.s32.totalorder %s2334_s14, %s2330_s13  ;;  %p2520_p3 = por %p63_p13, %p62_p5 }
  0x2b   : > { %p90_p4 = scmp.ne.s32.totalorder %s2330_s13, %s2326_s12  ;;  %p115_p9 = scmp.ne.s32.totalorder %s2322_s11, %s2318_s10 }
  0x2c   : > { %s2527_s2 = scalar_select %p75_p0, %s2334_s14, %s77_s29  }
  0x2d   : > { %p2531_p7 = por %p84_p1, %p57_p2  ;;  %p2535_p8 = por %p90_p4, %p63_p13 }
  0x2e   : > { %p116_p10 = scmp.eq.s32.totalorder %s1993_s7, 3  ;;  %p121_p5 = scmp.ne.s32.totalorder %s2318_s10, %s2314_s9 }
  0x2f   : > { %p122_p11 = scmp.eq.s32.totalorder %s1994_s8, 3  ;;  %s167_s12 = sand.u32 1, %s2334_s14  }
  0x30   : > { %p2543_p6 = por %p116_p10, %p115_p9  ;;  %s2002_s28 = sshll.u32 %s167_s12, 11 }
  0x31   : > { %p2548_p0 = por %p122_p11, %p121_p5  ;;  %s2016_s19 = sshll.u32 %s2358_s20, 11 }
  0x32   : > { %s177_s29 = scalar_lea.hbm %s3358_s1, %s2016_s19  ;;  %s171_s0 = scalar_lea.vmem [#allocation5], %s2002_s28 }
  0x33   : > { %s178_s4 = sshll.u32 %s177_s29, 4  ;;  %s180_s7 = sshll.u32 %s171_s0, 4  ;;  %s179_s4 = int_to_ptr.hbm [resolvable:$true] %s178_s4  ;;  %s181_s7 = int_to_ptr.vmem [resolvable:$true] %s180_s7 }
  0x34   : > { %p3381_p2 = scmp.lt.s32.totalorder %s2366_s22, 4  ;;  %s168_s8 = scalar_lea.sflag [#allocation6], %s167_s12 }
  0x35   : > { %s2371_s24 = smov 8   ;;  %s3382_s21 = smov 128  }
  0x36   : > { %p2028_p13 = pnand %p3381_p2, %p2531_p7  ;;  %192 = sbr.rel (%p2507_p12) target bundleno = 774 (0x306), region = 28 }
  0x37   : > { %s194_s23 = sand.u32 (!%p2507_p12), 1, %s2342_s16  }
  0x38   : > { %2030 = dma.hbm_to_vmem [thread:$0]  (!%p2028_p13), %s179_s4, 32768, %s181_s7, %s168_s8, %s3382_s21, %s3382_s21, %s2371_s24  }
  0x39   : > { %s2006_s19 = sshll.u32 (!%p2507_p12), %s194_s23, 11  ;;  %s195_s27 = scalar_lea.sflag (!%p2507_p12), [#allocation3], %s194_s23 }
  0x3a   : > { %s2565_s28 = scalar_lea.vmem (!%p2507_p12), [#allocation2], %s2006_s19 }
  0x3b   : > { %2301 = dma.done.wait (%p2520_p3), %s195_s27, 32768  }
  0x3c   : > { %2303 = vsyncadd (%p2520_p3), %s195_s27, 4294934528  ;;  %s204_s0 = sand.u32 1, %s2330_s13  }
  0x3d   : > { %s2007_s3 = sshll.u32 %s204_s0, 11  ;;  %s205_s21 = scalar_lea.sflag [#allocation6], %s204_s0 }
  0x3e   : > { %s2572_s24 = scalar_lea.vmem [#allocation5], %s2007_s3 }
  0x3f   : > { %2305 = dma.done.wait (%p2535_p8), %s205_s21, 32768  }
  0x40   : > { %2307 = vsyncadd (%p2535_p8), %s205_s21, 4294934528  ;;  %s232_s4 = sand.u32 1, %s2318_s10   ;;  %s3383_s30 = sld [smem:[#allocation11_spill]] }
  0x41   : > { %s2008_s18 = sshll.u32 %s232_s4, 7 }
  0x42   : > { %s2581_s12 = scalar_lea.vmem [#allocation7], %s2008_s18 }
  0x46   : > { %p2009_p12 = scmp.ne.s32.totalorder %s3383_s30, 0 }
  0x48   : > { %242 = sbr.rel (%p2009_p12) target bundleno = 94 (0x5e), region = 40 }
  0x4d   : > { %v2372_v0 = vmov 0.0  }
  0x4e   : > { %243 = vst [vmem:[%s2581_s12] sm:$0xff] %v2372_v0 }
  0x4f   : > { %244 = vst [vmem:[%s2581_s12 + $0x8] sm:$0xff] %v2372_v0 }
  0x50   : > { %245 = vst [vmem:[%s2581_s12 + $0x10] sm:$0xff] %v2372_v0 }
  0x51   : > { %246 = vst [vmem:[%s2581_s12 + $0x18] sm:$0xff] %v2372_v0 }
  0x52   : > { %247 = vst [vmem:[%s2581_s12 + $0x20] sm:$0xff] %v2372_v0 }
  0x53   : > { %248 = vst [vmem:[%s2581_s12 + $0x28] sm:$0xff] %v2372_v0 }
  0x54   : > { %249 = vst [vmem:[%s2581_s12 + $0x30] sm:$0xff] %v2372_v0 }
  0x55   : > { %250 = vst [vmem:[%s2581_s12 + $0x38] sm:$0xff] %v2372_v0 }
  0x56   : > { %251 = vst [vmem:[%s2581_s12 + $0x40] sm:$0xff] %v2372_v0 }
  0x57   : > { %252 = vst [vmem:[%s2581_s12 + $0x48] sm:$0xff] %v2372_v0 }
  0x58   : > { %253 = vst [vmem:[%s2581_s12 + $0x50] sm:$0xff] %v2372_v0 }
  0x59   : > { %254 = vst [vmem:[%s2581_s12 + $0x58] sm:$0xff] %v2372_v0 }
  0x5a   : > { %255 = vst [vmem:[%s2581_s12 + $0x60] sm:$0xff] %v2372_v0 }
  0x5b   : > { %256 = vst [vmem:[%s2581_s12 + $0x68] sm:$0xff] %v2372_v0 }
  0x5c   : > { %257 = vst [vmem:[%s2581_s12 + $0x70] sm:$0xff] %v2372_v0 }
  0x5d   : > { %258 = vst [vmem:[%s2581_s12 + $0x78] sm:$0xff] %v2372_v0 }
  0x5e PF: > { %v546_v1 = vld [vmem:[%s2572_s24 + $0x78] sm:$0xff]  ;;  %v545_v3 = vld [vmem:[%s2572_s24 + $0x70] sm:$0xff]  ;;  %v544_v7 = vld [vmem:[%s2572_s24 + $0x68] sm:$0xff]  ;;  %s3384_s25 = sld [smem:[#allocation12_spill]]  ;;  %s1873_s27 = sshll.u32 %s2581_s12, 4  ;;  %s1874_s27 = int_to_ptr.vmem [resolvable:$true] %s1873_s27 }
  0x5f   : > { %v578_v2 = vld [vmem:[%s2572_s24 + $0x178] sm:$0xff]  ;;  %787 = vmatpush.msra.mxu0 %v546_v1  ;;  %v577_v5 = vld [vmem:[%s2572_s24 + $0x170] sm:$0xff]  ;;  %v576_v9 = vld [vmem:[%s2572_s24 + $0x168] sm:$0xff]  ;;  %s3385_s23 = sld [smem:[#allocation17_spill]]  ;;  %s1860_s0 = scalar_lea.sflag [#allocation4], %s232_s4 }
  0x60   : > { %917 = vmatpush.msra.mxu2 %v578_v2  ;;  %v562_v4 = vld [vmem:[%s2572_s24 + $0xf8] sm:$0xff]  ;;  %v561_v8 = vld [vmem:[%s2572_s24 + $0xf0] sm:$0xff]  ;;  %v560_v11 = vld [vmem:[%s2572_s24 + $0xe8] sm:$0xff] }
  0x61   : > { %v594_v6 = vld [vmem:[%s2572_s24 + $0x1f8] sm:$0xff]  ;;  %852 = vmatpush.msra.mxu1 %v562_v4  ;;  %788 = vmatpush.msra.mxu0 %v545_v3  ;;  %v593_v10 = vld [vmem:[%s2572_s24 + $0x1f0] sm:$0xff]  ;;  %v543_v12 = vld [vmem:[%s2572_s24 + $0x60] sm:$0xff] }
  0x62   : > { %982 = vmatpush.msra.mxu3 %v594_v6  ;;  %918 = vmatpush.msra.mxu2 %v577_v5  ;;  %v575_v13 = vld [vmem:[%s2572_s24 + $0x160] sm:$0xff]  ;;  %v592_v14 = vld [vmem:[%s2572_s24 + $0x1e8] sm:$0xff]  ;;  %v542_v17 = vld [vmem:[%s2572_s24 + $0x58] sm:$0xff] }
  0x63   : > { %853 = vmatpush.msra.mxu1 %v561_v8  ;;  %789 = vmatpush.msra.mxu0 %v544_v7  ;;  %v559_v15 = vld [vmem:[%s2572_s24 + $0xe0] sm:$0xff]  ;;  %v574_v18 = vld [vmem:[%s2572_s24 + $0x158] sm:$0xff]  ;;  %v541_v21 = vld [vmem:[%s2572_s24 + $0x50] sm:$0xff] }
  0x64   : > { %983 = vmatpush.msra.mxu3 %v593_v10  ;;  %919 = vmatpush.msra.mxu2 %v576_v9  ;;  %v591_v16 = vld [vmem:[%s2572_s24 + $0x1e0] sm:$0xff]  ;;  %v558_v19 = vld [vmem:[%s2572_s24 + $0xd8] sm:$0xff]  ;;  %v573_v22 = vld [vmem:[%s2572_s24 + $0x150] sm:$0xff]  ;;  %s2017_s29 = sshll.u32 %s3384_s25, 7 }
  0x65   : > { %854 = vmatpush.msra.mxu1 %v560_v11  ;;  %790 = vmatpush.msra.mxu0 %v543_v12  ;;  %v590_v20 = vld [vmem:[%s2572_s24 + $0x1d8] sm:$0xff]  ;;  %v557_v23 = vld [vmem:[%s2572_s24 + $0xd0] sm:$0xff]  ;;  %v540_v25 = vld [vmem:[%s2572_s24 + $0x48] sm:$0xff]  ;;  %s1872_s19 = scalar_lea.hbm %s3385_s23, %s2017_s29  ;;  %s2236_s30 = scalar_lea.hbm %s3385_s23, 256 }
  0x66   : > { %984 = vmatpush.msra.mxu3 %v592_v14  ;;  %920 = vmatpush.msra.mxu2 %v575_v13  ;;  %v589_v24 = vld [vmem:[%s2572_s24 + $0x1d0] sm:$0xff]  ;;  %v572_v26 = vld [vmem:[%s2572_s24 + $0x148] sm:$0xff]  ;;  %v539_v29 = vld [vmem:[%s2572_s24 + $0x40] sm:$0xff] }
  0x67   : > { %855 = vmatpush.msra.mxu1 %v559_v15  ;;  %791 = vmatpush.msra.mxu0 %v542_v17  ;;  %v556_v27 = vld [vmem:[%s2572_s24 + $0xc8] sm:$0xff]  ;;  %v571_v30 = vld [vmem:[%s2572_s24 + $0x140] sm:$0xff]  ;;  %v538_v33 = vld [vmem:[%s2572_s24 + $0x38] sm:$0xff] }
  0x68   : > { %985 = vmatpush.msra.mxu3 %v591_v16  ;;  %921 = vmatpush.msra.mxu2 %v574_v18  ;;  %v588_v28 = vld [vmem:[%s2572_s24 + $0x1c8] sm:$0xff]  ;;  %v555_v31 = vld [vmem:[%s2572_s24 + $0xc0] sm:$0xff]  ;;  %v570_v34 = vld [vmem:[%s2572_s24 + $0x138] sm:$0xff] }
  0x69   : > { %856 = vmatpush.msra.mxu1 %v558_v19  ;;  %792 = vmatpush.msra.mxu0 %v541_v21  ;;  %v587_v32 = vld [vmem:[%s2572_s24 + $0x1c0] sm:$0xff]  ;;  %v554_v35 = vld [vmem:[%s2572_s24 + $0xb8] sm:$0xff]  ;;  %v537_v37 = vld [vmem:[%s2572_s24 + $0x30] sm:$0xff] }
  0x6a   : > { %986 = vmatpush.msra.mxu3 %v590_v20  ;;  %922 = vmatpush.msra.mxu2 %v573_v22  ;;  %v586_v36 = vld [vmem:[%s2572_s24 + $0x1b8] sm:$0xff]  ;;  %v569_v38 = vld [vmem:[%s2572_s24 + $0x130] sm:$0xff]  ;;  %v536_v41 = vld [vmem:[%s2572_s24 + $0x28] sm:$0xff] }
  0x6b   : > { %857 = vmatpush.msra.mxu1 %v557_v23  ;;  %793 = vmatpush.msra.mxu0 %v540_v25  ;;  %v553_v39 = vld [vmem:[%s2572_s24 + $0xb0] sm:$0xff]  ;;  %v568_v42 = vld [vmem:[%s2572_s24 + $0x128] sm:$0xff]  ;;  %v535_v45 = vld [vmem:[%s2572_s24 + $0x20] sm:$0xff] }
  0x6c   : > { %987 = vmatpush.msra.mxu3 %v589_v24  ;;  %923 = vmatpush.msra.mxu2 %v572_v26  ;;  %v585_v40 = vld [vmem:[%s2572_s24 + $0x1b0] sm:$0xff]  ;;  %v552_v43 = vld [vmem:[%s2572_s24 + $0xa8] sm:$0xff]  ;;  %v567_v46 = vld [vmem:[%s2572_s24 + $0x120] sm:$0xff] }
  0x6d   : > { %858 = vmatpush.msra.mxu1 %v556_v27  ;;  %794 = vmatpush.msra.mxu0 %v539_v29  ;;  %v584_v44 = vld [vmem:[%s2572_s24 + $0x1a8] sm:$0xff]  ;;  %v551_v47 = vld [vmem:[%s2572_s24 + $0xa0] sm:$0xff]  ;;  %v534_v49 = vld [vmem:[%s2572_s24 + $0x18] sm:$0xff] }
  0x6e   : > { %988 = vmatpush.msra.mxu3 %v588_v28  ;;  %924 = vmatpush.msra.mxu2 %v571_v30  ;;  %v583_v48 = vld [vmem:[%s2572_s24 + $0x1a0] sm:$0xff]  ;;  %v566_v50 = vld [vmem:[%s2572_s24 + $0x118] sm:$0xff]  ;;  %v533_v53 = vld [vmem:[%s2572_s24 + $0x10] sm:$0xff] }
  0x6f   : > { %859 = vmatpush.msra.mxu1 %v555_v31  ;;  %795 = vmatpush.msra.mxu0 %v538_v33  ;;  %v550_v51 = vld [vmem:[%s2572_s24 + $0x98] sm:$0xff]  ;;  %v565_v54 = vld [vmem:[%s2572_s24 + $0x110] sm:$0xff]  ;;  %v532_v57 = vld [vmem:[%s2572_s24 + $0x8] sm:$0xff] }
  0x70   : > { %989 = vmatpush.msra.mxu3 %v587_v32  ;;  %925 = vmatpush.msra.mxu2 %v570_v34  ;;  %v582_v52 = vld [vmem:[%s2572_s24 + $0x198] sm:$0xff]  ;;  %v549_v55 = vld [vmem:[%s2572_s24 + $0x90] sm:$0xff]  ;;  %v564_v58 = vld [vmem:[%s2572_s24 + $0x108] sm:$0xff] }
  0x71   : > { %860 = vmatpush.msra.mxu1 %v554_v35  ;;  %796 = vmatpush.msra.mxu0 %v537_v37  ;;  %v581_v56 = vld [vmem:[%s2572_s24 + $0x190] sm:$0xff]  ;;  %v548_v59 = vld [vmem:[%s2572_s24 + $0x88] sm:$0xff]  ;;  %v531_v61 = vld [vmem:[%s2572_s24] sm:$0xff] }
  0x72   : > { %990 = vmatpush.msra.mxu3 %v586_v36  ;;  %926 = vmatpush.msra.mxu2 %v569_v38  ;;  %v580_v60 = vld [vmem:[%s2572_s24 + $0x188] sm:$0xff]  ;;  %v563_v62 = vld [vmem:[%s2572_s24 + $0x100] sm:$0xff]  ;;  %v277_v0 = vld [vmem:[%s2565_s28 + $0x10] sm:$0xff] }
  0x73   : > { %861 = vmatpush.msra.mxu1 %v553_v39  ;;  %797 = vmatpush.msra.mxu0 %v536_v41  ;;  %v275_v63 = vld [vmem:[%s2565_s28] sm:$0xff]  ;;  %v642_v1 = vld [vmem:[%s2572_s24 + $0x378] sm:$0xff]  ;;  %v276_v4 = vld [vmem:[%s2565_s28 + $0x8] sm:$0xff] }
  0x74   : > { %991 = vmatpush.msra.mxu3 %v585_v40  ;;  %927 = vmatpush.msra.mxu2 %v568_v42  ;;  %v547_v2 = vld [vmem:[%s2572_s24 + $0x80] sm:$0xff]  ;;  %v278_v5 = vld [vmem:[%s2565_s28 + $0x18] sm:$0xff]  ;;  %v641_v9 = vld [vmem:[%s2572_s24 + $0x370] sm:$0xff] }
  0x75   : > { %862 = vmatpush.msra.mxu1 %v552_v43  ;;  %798 = vmatpush.msra.mxu0 %v535_v45  ;;  %v579_v3 = vld [vmem:[%s2572_s24 + $0x180] sm:$0xff]  ;;  %v610_v6 = vld [vmem:[%s2572_s24 + $0x278] sm:$0xff]  ;;  %v609_v10 = vld [vmem:[%s2572_s24 + $0x270] sm:$0xff] }
  0x76   : > { %992 = vmatpush.msra.mxu3 %v584_v44  ;;  %928 = vmatpush.msra.mxu2 %v567_v46  ;;  %v658_v7 = vld [vmem:[%s2572_s24 + $0x3f8] sm:$0xff]  ;;  %v657_v11 = vld [vmem:[%s2572_s24 + $0x3f0] sm:$0xff]  ;;  %v640_v13 = vld [vmem:[%s2572_s24 + $0x368] sm:$0xff] }
  0x77   : > { %863 = vmatpush.msra.mxu1 %v551_v47  ;;  %799 = vmatpush.msra.mxu0 %v534_v49  ;;  %v626_v8 = vld [vmem:[%s2572_s24 + $0x2f8] sm:$0xff]  ;;  %v625_v12 = vld [vmem:[%s2572_s24 + $0x2f0] sm:$0xff]  ;;  %v608_v14 = vld [vmem:[%s2572_s24 + $0x268] sm:$0xff] }
  0x78   : > { %993 = vmatpush.msra.mxu3 %v583_v48  ;;  %929 = vmatpush.msra.mxu2 %v566_v50  ;;  %v291_v15 = vld [vmem:[%s2565_s28 + $0x80] sm:$0xff]  ;;  %v293_v16 = vld [vmem:[%s2565_s28 + $0x90] sm:$0xff]  ;;  %v656_v17 = vld [vmem:[%s2572_s24 + $0x3e8] sm:$0xff] }
  0x79   : > { %864 = vmatpush.msra.mxu1 %v550_v51  ;;  %800 = vmatpush.msra.mxu0 %v533_v53  ;;  %v624_v18 = vld [vmem:[%s2572_s24 + $0x2e8] sm:$0xff]  ;;  %v639_v20 = vld [vmem:[%s2572_s24 + $0x360] sm:$0xff]  ;;  %v294_v21 = vld [vmem:[%s2565_s28 + $0x98] sm:$0xff] }
  0x7a   : > { %994 = vmatpush.msra.mxu3 %v582_v52  ;;  %930 = vmatpush.msra.mxu2 %v565_v54  ;;  %v292_v19 = vld [vmem:[%s2565_s28 + $0x88] sm:$0xff]  ;;  %v607_v22 = vld [vmem:[%s2572_s24 + $0x260] sm:$0xff]  ;;  %v638_v25 = vld [vmem:[%s2572_s24 + $0x358] sm:$0xff] }
  0x7b   : > { %865 = vmatpush.msra.mxu1 %v549_v55  ;;  %801 = vmatpush.msra.mxu0 %v532_v57  ;;  %v655_v23 = vld [vmem:[%s2572_s24 + $0x3e0] sm:$0xff]  ;;  %v606_v26 = vld [vmem:[%s2572_s24 + $0x258] sm:$0xff]  ;;  %v637_v29 = vld [vmem:[%s2572_s24 + $0x350] sm:$0xff] }
  0x7c   : > { %995 = vmatpush.msra.mxu3 %v581_v56  ;;  %931 = vmatpush.msra.mxu2 %v564_v58  ;;  %v623_v24 = vld [vmem:[%s2572_s24 + $0x2e0] sm:$0xff]  ;;  %v654_v27 = vld [vmem:[%s2572_s24 + $0x3d8] sm:$0xff]  ;;  %v605_v30 = vld [vmem:[%s2572_s24 + $0x250] sm:$0xff] }
  0x7d   : > { %866 = vmatpush.msra.mxu1 %v548_v59  ;;  %802 = vmatpush.msra.mxu0 %v531_v61  ;;  %v622_v28 = vld [vmem:[%s2572_s24 + $0x2d8] sm:$0xff]  ;;  %v307_v31 = vld [vmem:[%s2565_s28 + $0x100] sm:$0xff]  ;;  %v309_v32 = vld [vmem:[%s2565_s28 + $0x110] sm:$0xff] }
  0x7e   : > { %996 = vmatpush.msra.mxu3 %v580_v60  ;;  %932 = vmatpush.msra.mxu2 %v563_v62  ;;  %v653_v33 = vld [vmem:[%s2572_s24 + $0x3d0] sm:$0xff]  ;;  %v308_v35 = vld [vmem:[%s2565_s28 + $0x108] sm:$0xff]  ;;  %v310_v36 = vld [vmem:[%s2565_s28 + $0x118] sm:$0xff] }
  0x7f   : > { %803 = vmatmul.f32.vlgmr.msra.gmra.mxu0 %v275_v63  ;;  %933 = vmatmul.f32.vlgmr.msra.gmra.mxu2 %v277_v0  ;;  %v621_v34 = vld [vmem:[%s2572_s24 + $0x2d0] sm:$0xff]  ;;  %v636_v37 = vld [vmem:[%s2572_s24 + $0x348] sm:$0xff]  ;;  %v323_v41 = vld [vmem:[%s2565_s28 + $0x180] sm:$0xff] }
  0x80   : > { %1177 = vmatpush.msrb.mxu2 %v642_v1  ;;  %867 = vmatpush.msra.mxu1 %v547_v2  ;;  %v604_v38 = vld [vmem:[%s2572_s24 + $0x248] sm:$0xff]  ;;  %v325_v42 = vld [vmem:[%s2565_s28 + $0x190] sm:$0xff]  ;;  %v326_v44 = vld [vmem:[%s2565_s28 + $0x198] sm:$0xff] }
  0x81   : > { %997 = vmatpush.msra.mxu3 %v579_v3  ;;  %868 = vmatmul.f32.vlgmr.msra.gmra.mxu1 %v276_v4  ;;  %v652_v39 = vld [vmem:[%s2572_s24 + $0x3c8] sm:$0xff]  ;;  %v635_v45 = vld [vmem:[%s2572_s24 + $0x340] sm:$0xff]  ;;  %v341_v50 = vld [vmem:[%s2565_s28 + $0x210] sm:$0xff] }
  0x82   : > { %998 = vmatmul.f32.vlgmr.msra.gmra.mxu3 %v278_v5  ;;  %1047 = vmatpush.msrb.mxu0 %v610_v6  ;;  %v620_v40 = vld [vmem:[%s2572_s24 + $0x2c8] sm:$0xff]  ;;  %v603_v46 = vld [vmem:[%s2572_s24 + $0x240] sm:$0xff]  ;;  %v342_v52 = vld [vmem:[%s2565_s28 + $0x218] sm:$0xff] }
  0x83   : > { %1242 = vmatpush.msrb.mxu3 %v658_v7  ;;  %1112 = vmatpush.msrb.mxu1 %v626_v8  ;;  %v324_v43 = vld [vmem:[%s2565_s28 + $0x188] sm:$0xff]  ;;  %v651_v47 = vld [vmem:[%s2572_s24 + $0x3c0] sm:$0xff]  ;;  %v634_v53 = vld [vmem:[%s2572_s24 + $0x338] sm:$0xff] }
  0x84   : > { %1178 = vmatpush.msrb.mxu2 %v641_v9  ;;  %1048 = vmatpush.msrb.mxu0 %v609_v10  ;;  %v619_v48 = vld [vmem:[%s2572_s24 + $0x2c0] sm:$0xff]  ;;  %v340_v51 = vld [vmem:[%s2565_s28 + $0x208] sm:$0xff]  ;;  %v602_v54 = vld [vmem:[%s2572_s24 + $0x238] sm:$0xff] }
  0x85   : > { %1243 = vmatpush.msrb.mxu3 %v657_v11  ;;  %1113 = vmatpush.msrb.mxu1 %v625_v12  ;;  %v339_v49 = vld [vmem:[%s2565_s28 + $0x200] sm:$0xff]  ;;  %v650_v55 = vld [vmem:[%s2572_s24 + $0x3b8] sm:$0xff]  ;;  %v357_v58 = vld [vmem:[%s2565_s28 + $0x290] sm:$0xff] }
  0x86   : > { %1179 = vmatpush.msrb.mxu2 %v640_v13  ;;  %1049 = vmatpush.msrb.mxu0 %v608_v14  ;;  %v618_v56 = vld [vmem:[%s2572_s24 + $0x2b8] sm:$0xff]  ;;  %v355_v57 = vld [vmem:[%s2565_s28 + $0x280] sm:$0xff]  ;;  %v356_v59 = vld [vmem:[%s2565_s28 + $0x288] sm:$0xff] }
  0x87   : > { %806 = vmatmul.f32.gmra.mxu0 %v291_v15  ;;  %936 = vmatmul.f32.gmra.mxu2 %v293_v16  ;;  %v358_v60 = vld [vmem:[%s2565_s28 + $0x298] sm:$0xff]  ;;  %v633_v61 = vld [vmem:[%s2572_s24 + $0x330] sm:$0xff]  ;;  %v371_v1 = vld [vmem:[%s2565_s28 + $0x300] sm:$0xff] }
  0x88   : > { %1244 = vmatpush.msrb.mxu3 %v656_v17  ;;  %1114 = vmatpush.msrb.mxu1 %v624_v18  ;;  %v601_v62 = vld [vmem:[%s2572_s24 + $0x230] sm:$0xff]  ;;  %v372_v3 = vld [vmem:[%s2565_s28 + $0x308] sm:$0xff]  ;;  %v374_v4 = vld [vmem:[%s2565_s28 + $0x318] sm:$0xff] }
  0x89   : > { %871 = vmatmul.f32.gmra.mxu1 %v292_v19  ;;  %1180 = vmatpush.msrb.mxu2 %v639_v20  ;;  %v649_v63 = vld [vmem:[%s2572_s24 + $0x3b0] sm:$0xff]  ;;  %v632_v5 = vld [vmem:[%s2572_s24 + $0x328] sm:$0xff]  ;;  %v387_v9 = vld [vmem:[%s2565_s28 + $0x380] sm:$0xff] }
  0x8a   : > { %1001 = vmatmul.f32.gmra.mxu3 %v294_v21  ;;  %1050 = vmatpush.msrb.mxu0 %v607_v22  ;;  %v617_v0 = vld [vmem:[%s2572_s24 + $0x2b0] sm:$0xff]  ;;  %v600_v6 = vld [vmem:[%s2572_s24 + $0x228] sm:$0xff]  ;;  %v390_v12 = vld [vmem:[%s2565_s28 + $0x398] sm:$0xff] }
  0x8b   : > { %1245 = vmatpush.msrb.mxu3 %v655_v23  ;;  %1115 = vmatpush.msrb.mxu1 %v623_v24  ;;  %v373_v2 = vld [vmem:[%s2565_s28 + $0x310] sm:$0xff]  ;;  %v648_v7 = vld [vmem:[%s2572_s24 + $0x3a8] sm:$0xff]  ;;  %v631_v13 = vld [vmem:[%s2572_s24 + $0x320] sm:$0xff] }
  0x8c   : > { %1181 = vmatpush.msrb.mxu2 %v638_v25  ;;  %1051 = vmatpush.msrb.mxu0 %v606_v26  ;;  %v616_v8 = vld [vmem:[%s2572_s24 + $0x2a8] sm:$0xff]  ;;  %v389_v10 = vld [vmem:[%s2565_s28 + $0x390] sm:$0xff]  ;;  %v599_v14 = vld [vmem:[%s2572_s24 + $0x220] sm:$0xff] }
  0x8d   : > { %1246 = vmatpush.msrb.mxu3 %v654_v27  ;;  %1116 = vmatpush.msrb.mxu1 %v622_v28  ;;  %v388_v11 = vld [vmem:[%s2565_s28 + $0x388] sm:$0xff]  ;;  %v647_v15 = vld [vmem:[%s2572_s24 + $0x3a0] sm:$0xff]  ;;  %v405_v18 = vld [vmem:[%s2565_s28 + $0x410] sm:$0xff] }
  0x8e   : > { %1182 = vmatpush.msrb.mxu2 %v637_v29  ;;  %1052 = vmatpush.msrb.mxu0 %v605_v30  ;;  %v615_v16 = vld [vmem:[%s2572_s24 + $0x2a0] sm:$0xff]  ;;  %v404_v19 = vld [vmem:[%s2565_s28 + $0x408] sm:$0xff]  ;;  %v406_v20 = vld [vmem:[%s2565_s28 + $0x418] sm:$0xff] }
  0x8f   : > { %809 = vmatmul.f32.gmra.mxu0 %v307_v31  ;;  %939 = vmatmul.f32.gmra.mxu2 %v309_v32  ;;  %v403_v17 = vld [vmem:[%s2565_s28 + $0x400] sm:$0xff]  ;;  %v630_v21 = vld [vmem:[%s2572_s24 + $0x318] sm:$0xff]  ;;  %v421_v26 = vld [vmem:[%s2565_s28 + $0x490] sm:$0xff] }
  0x90   : > { %1247 = vmatpush.msrb.mxu3 %v653_v33  ;;  %1117 = vmatpush.msrb.mxu1 %v621_v34  ;;  %v598_v22 = vld [vmem:[%s2572_s24 + $0x218] sm:$0xff]  ;;  %v419_v25 = vld [vmem:[%s2565_s28 + $0x480] sm:$0xff]  ;;  %v420_v27 = vld [vmem:[%s2565_s28 + $0x488] sm:$0xff] }
  0x91   : > { %874 = vmatmul.f32.gmra.mxu1 %v308_v35  ;;  %1183 = vmatpush.msrb.mxu2 %v636_v37  ;;  %v646_v23 = vld [vmem:[%s2572_s24 + $0x398] sm:$0xff]  ;;  %v629_v29 = vld [vmem:[%s2572_s24 + $0x310] sm:$0xff]  ;;  %v435_v33 = vld [vmem:[%s2565_s28 + $0x500] sm:$0xff] }
  0x92   : > { %1004 = vmatmul.f32.gmra.mxu3 %v310_v36  ;;  %1053 = vmatpush.msrb.mxu0 %v604_v38  ;;  %v614_v24 = vld [vmem:[%s2572_s24 + $0x298] sm:$0xff]  ;;  %v597_v30 = vld [vmem:[%s2572_s24 + $0x210] sm:$0xff]  ;;  %v436_v35 = vld [vmem:[%s2565_s28 + $0x508] sm:$0xff] }
  0x93   : > { %1248 = vmatpush.msrb.mxu3 %v652_v39  ;;  %1118 = vmatpush.msrb.mxu1 %v620_v40  ;;  %v422_v28 = vld [vmem:[%s2565_s28 + $0x498] sm:$0xff]  ;;  %v645_v31 = vld [vmem:[%s2572_s24 + $0x390] sm:$0xff]  ;;  %v628_v37 = vld [vmem:[%s2572_s24 + $0x308] sm:$0xff] }
  0x94   : > { %1184 = vmatpush.msrb.mxu2 %v635_v45  ;;  %1054 = vmatpush.msrb.mxu0 %v603_v46  ;;  %v613_v32 = vld [vmem:[%s2572_s24 + $0x290] sm:$0xff]  ;;  %v438_v36 = vld [vmem:[%s2565_s28 + $0x518] sm:$0xff]  ;;  %v596_v38 = vld [vmem:[%s2572_s24 + $0x208] sm:$0xff] }
  0x95   : > { %1249 = vmatpush.msrb.mxu3 %v651_v47  ;;  %1119 = vmatpush.msrb.mxu1 %v619_v48  ;;  %v437_v34 = vld [vmem:[%s2565_s28 + $0x510] sm:$0xff]  ;;  %v644_v39 = vld [vmem:[%s2572_s24 + $0x388] sm:$0xff]  ;;  %v627_v45 = vld [vmem:[%s2572_s24 + $0x300] sm:$0xff] }
  0x96   : > { %1185 = vmatpush.msrb.mxu2 %v634_v53  ;;  %1055 = vmatpush.msrb.mxu0 %v602_v54  ;;  %v612_v40 = vld [vmem:[%s2572_s24 + $0x288] sm:$0xff]  ;;  %v595_v46 = vld [vmem:[%s2572_s24 + $0x200] sm:$0xff]  ;;  %v706_v53 = vld [vmem:[%s2572_s24 + $0x578] sm:$0xff] }
  0x97   : > { %812 = vmatmul.f32.gmra.mxu0 %v323_v41  ;;  %942 = vmatmul.f32.gmra.mxu2 %v325_v42  ;;  %v451_v41 = vld [vmem:[%s2565_s28 + $0x580] sm:$0xff]  ;;  %v453_v42 = vld [vmem:[%s2565_s28 + $0x590] sm:$0xff]  ;;  %v674_v54 = vld [vmem:[%s2572_s24 + $0x478] sm:$0xff] }
  0x98   : > { %1250 = vmatpush.msrb.mxu3 %v650_v55  ;;  %1120 = vmatpush.msrb.mxu1 %v618_v56  ;;  %v643_v47 = vld [vmem:[%s2572_s24 + $0x380] sm:$0xff]  ;;  %v722_v55 = vld [vmem:[%s2572_s24 + $0x5f8] sm:$0xff] }
  0x99   : > { %877 = vmatmul.f32.gmra.mxu1 %v324_v43  ;;  %1186 = vmatpush.msrb.mxu2 %v633_v61  ;;  %v452_v43 = vld [vmem:[%s2565_s28 + $0x588] sm:$0xff]  ;;  %v611_v48 = vld [vmem:[%s2572_s24 + $0x280] sm:$0xff]  ;;  %v690_v56 = vld [vmem:[%s2572_s24 + $0x4f8] sm:$0xff] }
  0x9a   : > { %1007 = vmatmul.f32.gmra.mxu3 %v326_v44  ;;  %1056 = vmatpush.msrb.mxu0 %v601_v62  ;;  %v454_v44 = vld [vmem:[%s2565_s28 + $0x598] sm:$0xff]  ;;  %v705_v61 = vld [vmem:[%s2572_s24 + $0x570] sm:$0xff] }
  0x9b   : > { %1251 = vmatpush.msrb.mxu3 %v649_v63  ;;  %1121 = vmatpush.msrb.mxu1 %v617_v0  ;;  %v673_v62 = vld [vmem:[%s2572_s24 + $0x470] sm:$0xff] }
  0x9c   : > { %1187 = vmatpush.msrb.mxu2 %v632_v5  ;;  %1057 = vmatpush.msrb.mxu0 %v600_v6  ;;  %v721_v63 = vld [vmem:[%s2572_s24 + $0x5f0] sm:$0xff]  ;;  %v704_v5 = vld [vmem:[%s2572_s24 + $0x568] sm:$0xff] }
  0x9d   : > { %1252 = vmatpush.msrb.mxu3 %v648_v7  ;;  %1122 = vmatpush.msrb.mxu1 %v616_v8  ;;  %v689_v0 = vld [vmem:[%s2572_s24 + $0x4f0] sm:$0xff]  ;;  %v672_v6 = vld [vmem:[%s2572_s24 + $0x468] sm:$0xff] }
  0x9e   : > { %1188 = vmatpush.msrb.mxu2 %v631_v13  ;;  %1058 = vmatpush.msrb.mxu0 %v599_v14  ;;  %v720_v7 = vld [vmem:[%s2572_s24 + $0x5e8] sm:$0xff]  ;;  %v703_v13 = vld [vmem:[%s2572_s24 + $0x560] sm:$0xff] }
  0x9f   : > { %815 = vmatmul.f32.gmra.mxu0 %v339_v49  ;;  %945 = vmatmul.f32.gmra.mxu2 %v341_v50  ;;  %v467_v49 = vld [vmem:[%s2565_s28 + $0x600] sm:$0xff]  ;;  %v469_v50 = vld [vmem:[%s2565_s28 + $0x610] sm:$0xff]  ;;  %v688_v8 = vld [vmem:[%s2572_s24 + $0x4e8] sm:$0xff] }
  0xa0   : > { %1253 = vmatpush.msrb.mxu3 %v647_v15  ;;  %1123 = vmatpush.msrb.mxu1 %v615_v16  ;;  %v671_v14 = vld [vmem:[%s2572_s24 + $0x460] sm:$0xff] }
  0xa1   : > { %880 = vmatmul.f32.gmra.mxu1 %v340_v51  ;;  %1189 = vmatpush.msrb.mxu2 %v630_v21  ;;  %v468_v51 = vld [vmem:[%s2565_s28 + $0x608] sm:$0xff]  ;;  %v719_v15 = vld [vmem:[%s2572_s24 + $0x5e0] sm:$0xff] }
  0xa2   : > { %1010 = vmatmul.f32.gmra.mxu3 %v342_v52  ;;  %1059 = vmatpush.msrb.mxu0 %v598_v22  ;;  %v470_v52 = vld [vmem:[%s2565_s28 + $0x618] sm:$0xff]  ;;  %v687_v16 = vld [vmem:[%s2572_s24 + $0x4e0] sm:$0xff]  ;;  %v280_v21 = vld [vmem:[%s2565_s28 + $0x28] sm:$0xff] }
  0xa3   : > { %1254 = vmatpush.msrb.mxu3 %v646_v23  ;;  %1124 = vmatpush.msrb.mxu1 %v614_v24  ;;  %v282_v22 = vld [vmem:[%s2565_s28 + $0x38] sm:$0xff] }
  0xa4   : > { %1190 = vmatpush.msrb.mxu2 %v629_v29  ;;  %1060 = vmatpush.msrb.mxu0 %v597_v30  ;;  %v702_v23 = vld [vmem:[%s2572_s24 + $0x558] sm:$0xff] }
  0xa5   : > { %1255 = vmatpush.msrb.mxu3 %v645_v31  ;;  %1125 = vmatpush.msrb.mxu1 %v613_v32  ;;  %v686_v29 = vld [vmem:[%s2572_s24 + $0x4d8] sm:$0xff]  ;;  %v295_v31 = vld [vmem:[%s2565_s28 + $0xa0] sm:$0xff]  ;;  %v297_v32 = vld [vmem:[%s2565_s28 + $0xb0] sm:$0xff] }
  0xa6   : > { %1191 = vmatpush.msrb.mxu2 %v628_v37  ;;  %1061 = vmatpush.msrb.mxu0 %v596_v38  ;;  %v298_v37 = vld [vmem:[%s2565_s28 + $0xb8] sm:$0xff]  ;;  %v701_v38 = vld [vmem:[%s2572_s24 + $0x550] sm:$0xff] }
  0xa7   : > { %818 = vmatmul.f32.gmra.mxu0 %v355_v57  ;;  %948 = vmatmul.f32.gmra.mxu2 %v357_v58  ;;  %v483_v57 = vld [vmem:[%s2565_s28 + $0x680] sm:$0xff]  ;;  %v485_v58 = vld [vmem:[%s2565_s28 + $0x690] sm:$0xff] }
  0xa8   : > { %1256 = vmatpush.msrb.mxu3 %v644_v39  ;;  %1126 = vmatpush.msrb.mxu1 %v612_v40 }
  0xa9   : > { %883 = vmatmul.f32.gmra.mxu1 %v356_v59  ;;  %1192 = vmatpush.msrb.mxu2 %v627_v45  ;;  %v484_v59 = vld [vmem:[%s2565_s28 + $0x688] sm:$0xff] }
  0xaa   : > { %1013 = vmatmul.f32.gmra.mxu3 %v358_v60  ;;  %1062 = vmatpush.msrb.mxu0 %v595_v46  ;;  %v486_v60 = vld [vmem:[%s2565_s28 + $0x698] sm:$0xff]  ;;  %v311_v46 = vld [vmem:[%s2565_s28 + $0x120] sm:$0xff] }
  0xab   : > { %1257 = vmatpush.msrb.mxu3 %v643_v47  ;;  %1127 = vmatpush.msrb.mxu1 %v611_v48  ;;  %v313_v47 = vld [vmem:[%s2565_s28 + $0x130] sm:$0xff] }
  0xac   : > { %1437 = vmatpush.msra.mxu2 %v706_v53  ;;  %1307 = vmatpush.msra.mxu0 %v674_v54  ;;  %v700_v53 = vld [vmem:[%s2572_s24 + $0x548] sm:$0xff] }
  0xad   : > { %1502 = vmatpush.msra.mxu3 %v722_v55  ;;  %1372 = vmatpush.msra.mxu1 %v690_v56  ;;  %v668_v56 = vld [vmem:[%s2572_s24 + $0x448] sm:$0xff] }
  0xae   : > { %1438 = vmatpush.msra.mxu2 %v705_v61  ;;  %1308 = vmatpush.msra.mxu0 %v673_v62  ;;  %v327_v61 = vld [vmem:[%s2565_s28 + $0x1a0] sm:$0xff]  ;;  %v329_v62 = vld [vmem:[%s2565_s28 + $0x1b0] sm:$0xff] }
  0xaf   : > { %821 = vmatmul.f32.gmra.mxu0 %v371_v1  ;;  %951 = vmatmul.f32.gmra.mxu2 %v373_v2  ;;  %v499_v1 = vld [vmem:[%s2565_s28 + $0x700] sm:$0xff]  ;;  %v501_v2 = vld [vmem:[%s2565_s28 + $0x710] sm:$0xff] }
  0xb0   : > { %1503 = vmatpush.msra.mxu3 %v721_v63  ;;  %1373 = vmatpush.msra.mxu1 %v689_v0 }
  0xb1   : > { %886 = vmatmul.f32.gmra.mxu1 %v372_v3  ;;  %v500_v3 = vld [vmem:[%s2565_s28 + $0x708] sm:$0xff]  ;;  %1439 = vmatpush.msra.mxu2 %v704_v5 }
  0xb2   : > { %1016 = vmatmul.f32.gmra.mxu3 %v374_v4  ;;  %v502_v4 = vld [vmem:[%s2565_s28 + $0x718] sm:$0xff]  ;;  %1309 = vmatpush.msra.mxu0 %v672_v6 }
  0xb3   : > { %1504 = vmatpush.msra.mxu3 %v720_v7  ;;  %1374 = vmatpush.msra.mxu1 %v688_v8  ;;  %v667_v7 = vld [vmem:[%s2572_s24 + $0x440] sm:$0xff] }
  0xb4   : > { %1440 = vmatpush.msra.mxu2 %v703_v13  ;;  %1310 = vmatpush.msra.mxu0 %v671_v14  ;;  %v715_v8 = vld [vmem:[%s2572_s24 + $0x5c0] sm:$0xff]  ;;  %v345_v13 = vld [vmem:[%s2565_s28 + $0x230] sm:$0xff] }
  0xb5   : > { %1505 = vmatpush.msra.mxu3 %v719_v15  ;;  %1375 = vmatpush.msra.mxu1 %v687_v16 }
  0xb6   : > { %1441 = vmatpush.msra.mxu2 %v702_v23  ;;  %v714_v23 = vld [vmem:[%s2572_s24 + $0x5b8] sm:$0xff] }
  0xb7   : > { %824 = vmatmul.f32.gmra.mxu0 %v387_v9  ;;  %954 = vmatmul.f32.gmra.mxu2 %v389_v10  ;;  %v515_v9 = vld [vmem:[%s2565_s28 + $0x780] sm:$0xff]  ;;  %v517_v10 = vld [vmem:[%s2565_s28 + $0x790] sm:$0xff] }
  0xb8   : > { %1376 = vmatpush.msra.mxu1 %v686_v29  ;;  %1442 = vmatpush.msra.mxu2 %v701_v38  ;;  %v665_v38 = vld [vmem:[%s2572_s24 + $0x430] sm:$0xff] }
  0xb9   : > { %889 = vmatmul.f32.gmra.mxu1 %v388_v11  ;;  %v516_v11 = vld [vmem:[%s2565_s28 + $0x788] sm:$0xff] }
  0xba   : > { %1019 = vmatmul.f32.gmra.mxu3 %v390_v12  ;;  %v518_v12 = vld [vmem:[%s2565_s28 + $0x798] sm:$0xff]  ;;  %1443 = vmatpush.msra.mxu2 %v700_v53 }
  0xbf   : > { %827 = vmatmul.f32.gmra.mxu0 %v403_v17  ;;  %957 = vmatmul.f32.gmra.mxu2 %v405_v18  ;;  %v279_v18 = vld [vmem:[%s2565_s28 + $0x20] sm:$0xff] }
  0xc1   : > { %892 = vmatmul.f32.gmra.mxu1 %v404_v19  ;;  %v281_v19 = vld [vmem:[%s2565_s28 + $0x30] sm:$0xff] }
  0xc2   : > { %1022 = vmatmul.f32.gmra.mxu3 %v406_v20 }
  0xc7   : > { %830 = vmatmul.f32.gmra.mxu0 %v419_v25  ;;  %960 = vmatmul.f32.gmra.mxu2 %v421_v26  ;;  %v670_v26 = vld [vmem:[%s2572_s24 + $0x458] sm:$0xff] }
  0xc8   : > { %1311 = vmatpush.msra.mxu0 %v670_v26 }
  0xc9   : > { %895 = vmatmul.f32.gmra.mxu1 %v420_v27  ;;  %v718_v27 = vld [vmem:[%s2572_s24 + $0x5d8] sm:$0xff] }
  0xca   : > { %1025 = vmatmul.f32.gmra.mxu3 %v422_v28 }
  0xcb   : > { %1506 = vmatpush.msra.mxu3 %v718_v27  ;;  %v359_v27 = vld [vmem:[%s2565_s28 + $0x2a0] sm:$0xff] }
  0xcf   : > { %833 = vmatmul.f32.gmra.mxu0 %v435_v33  ;;  %963 = vmatmul.f32.gmra.mxu2 %v437_v34 }
  0xd1   : > { %898 = vmatmul.f32.gmra.mxu1 %v436_v35 }
  0xd2   : > { %1028 = vmatmul.f32.gmra.mxu3 %v438_v36  ;;  %v296_v36 = vld [vmem:[%s2565_s28 + $0xa8] sm:$0xff] }
  0xd7   : > { %836 = vmatmul.f32.gmra.mxu0 %v451_v41  ;;  %966 = vmatmul.f32.gmra.mxu2 %v453_v42  ;;  %v669_v41 = vld [vmem:[%s2572_s24 + $0x450] sm:$0xff] }
  0xd8   : > { %v717_v42 = vld [vmem:[%s2572_s24 + $0x5d0] sm:$0xff]  ;;  %1312 = vmatpush.msra.mxu0 %v669_v41 }
  0xd9   : > { %901 = vmatmul.f32.gmra.mxu1 %v452_v43  ;;  %1507 = vmatpush.msra.mxu3 %v717_v42  ;;  %v681_v41 = vld [vmem:[%s2572_s24 + $0x4b0] sm:$0xff] }
  0xda   : > { %1031 = vmatmul.f32.gmra.mxu3 %v454_v44  ;;  %v685_v44 = vld [vmem:[%s2572_s24 + $0x4d0] sm:$0xff]  ;;  %1313 = vmatpush.msra.mxu0 %v668_v56 }
  0xdb   : > { %1377 = vmatpush.msra.mxu1 %v685_v44  ;;  %v377_v44 = vld [vmem:[%s2565_s28 + $0x330] sm:$0xff] }
  0xdc   : > { %1314 = vmatpush.msra.mxu0 %v667_v7  ;;  %v711_v7 = vld [vmem:[%s2572_s24 + $0x5a0] sm:$0xff] }
  0xdf   : > { %839 = vmatmul.f32.gmra.mxu0 %v467_v49  ;;  %969 = vmatmul.f32.gmra.mxu2 %v469_v50 }
  0xe1   : > { %904 = vmatmul.f32.gmra.mxu1 %v468_v51  ;;  %v312_v51 = vld [vmem:[%s2565_s28 + $0x128] sm:$0xff] }
  0xe2   : > { %1034 = vmatmul.f32.gmra.mxu3 %v470_v52  ;;  %v314_v52 = vld [vmem:[%s2565_s28 + $0x138] sm:$0xff] }
  0xe7   : > { %842 = vmatmul.f32.gmra.mxu0 %v483_v57  ;;  %972 = vmatmul.f32.gmra.mxu2 %v485_v58  ;;  %v716_v57 = vld [vmem:[%s2572_s24 + $0x5c8] sm:$0xff] }
  0xe8   : > { %1508 = vmatpush.msra.mxu3 %v716_v57  ;;  %v680_v57 = vld [vmem:[%s2572_s24 + $0x4a8] sm:$0xff] }
  0xe9   : > { %907 = vmatmul.f32.gmra.mxu1 %v484_v59  ;;  %v684_v59 = vld [vmem:[%s2572_s24 + $0x4c8] sm:$0xff] }
  0xea   : > { %1037 = vmatmul.f32.gmra.mxu3 %v486_v60  ;;  %1378 = vmatpush.msra.mxu1 %v684_v59  ;;  %v391_v59 = vld [vmem:[%s2565_s28 + $0x3a0] sm:$0xff] }
  0xeb   : > { %1509 = vmatpush.msra.mxu3 %v715_v8 }
  0xed   : > { %1510 = vmatpush.msra.mxu3 %v714_v23  ;;  %v710_v23 = vld [vmem:[%s2572_s24 + $0x598] sm:$0xff] }
  0xef   : > { %845 = vmatmul.f32.gmra.mxu0 %v499_v1  ;;  %975 = vmatmul.f32.gmra.mxu2 %v501_v2  ;;  %v328_v2 = vld [vmem:[%s2565_s28 + $0x1a8] sm:$0xff] }
  0xf1   : > { %910 = vmatmul.f32.gmra.mxu1 %v500_v3  ;;  %v330_v3 = vld [vmem:[%s2565_s28 + $0x1b8] sm:$0xff] }
  0xf2   : > { %1040 = vmatmul.f32.gmra.mxu3 %v502_v4  ;;  %v699_v4 = vld [vmem:[%s2572_s24 + $0x540] sm:$0xff] }
  0xf3   : > { %1444 = vmatpush.msra.mxu2 %v699_v4 }
  0xf7   : > { %848 = vmatmul.f32.gmra.mxu0 %v515_v9  ;;  %978 = vmatmul.f32.gmra.mxu2 %v517_v10  ;;  %v683_v10 = vld [vmem:[%s2572_s24 + $0x4c0] sm:$0xff] }
  0xf8   : > { %1379 = vmatpush.msra.mxu1 %v683_v10 }
  0xf9   : > { %913 = vmatmul.f32.gmra.mxu1 %v516_v11 }
  0xfa   : > { %1043 = vmatmul.f32.gmra.mxu3 %v518_v12  ;;  %v343_v12 = vld [vmem:[%s2565_s28 + $0x220] sm:$0xff] }
  0xfc   : > { %v804_v17 = vpop.f32.mrf.mxu0 }
  0xfe   : > { %v869_v20 = vpop.f32.mrf.mxu1 }
  0xff   : > { %1063 = vmatmul.f32.vlgmr.msrb.gmra.mxu0 %v279_v18  ;;  %1193 = vmatmul.f32.vlgmr.msrb.gmra.mxu2 %v281_v19  ;;  %v870_v24 = vadd.f32 %v869_v20, %v804_v17  ;;  %v344_v17 = vld [vmem:[%s2565_s28 + $0x228] sm:$0xff]  ;;  %v346_v18 = vld [vmem:[%s2565_s28 + $0x238] sm:$0xff] }
 0x100   : > { %v698_v19 = vld [vmem:[%s2572_s24 + $0x538] sm:$0xff] }
 0x101   : > { %1128 = vmatmul.f32.vlgmr.msrb.gmra.mxu1 %v280_v21  ;;  %1445 = vmatpush.msra.mxu2 %v698_v19  ;;  %v694_v19 = vld [vmem:[%s2572_s24 + $0x518] sm:$0xff] }
 0x102   : > { %1258 = vmatmul.f32.vlgmr.msrb.gmra.mxu3 %v282_v22  ;;  %v934_v25 = vpop.f32.mrf.mxu2  ;;  %v666_v22 = vld [vmem:[%s2572_s24 + $0x438] sm:$0xff] }
 0x103   : > { %v935_v28 = vadd.f32 %v934_v25, %v870_v24  ;;  %1315 = vmatpush.msra.mxu0 %v666_v22  ;;  %v682_v25 = vld [vmem:[%s2572_s24 + $0x4b8] sm:$0xff] }
 0x104   : > { %v807_v30 = vpop.f32.mrf.mxu0  ;;  %1380 = vmatpush.msra.mxu1 %v682_v25  ;;  %v662_v22 = vld [vmem:[%s2572_s24 + $0x418] sm:$0xff] }
 0x105   : > { %v999_v33 = vpop.f32.mrf.mxu3  ;;  %1316 = vmatpush.msra.mxu0 %v665_v38  ;;  %v678_v25 = vld [vmem:[%s2572_s24 + $0x498] sm:$0xff] }
 0x106   : > { %v2818_v34 = vadd.f32 %v999_v33, %v935_v28  ;;  %v872_v35 = vpop.f32.mrf.mxu1  ;;  %v361_v28 = vld [vmem:[%s2565_s28 + $0x2b0] sm:$0xff]  ;;  %v362_v33 = vld [vmem:[%s2565_s28 + $0x2b8] sm:$0xff]  ;;  %1381 = vmatpush.msra.mxu1 %v681_v41 }
 0x107   : > { %1066 = vmatmul.f32.gmra.mxu0 %v295_v31  ;;  %1196 = vmatmul.f32.gmra.mxu2 %v297_v32  ;;  %v873_v39 = vadd.f32 %v872_v35, %v807_v30  ;;  %v360_v32 = vld [vmem:[%s2565_s28 + $0x2a8] sm:$0xff]  ;;  %v697_v35 = vld [vmem:[%s2572_s24 + $0x530] sm:$0xff] }
 0x108   : > { %1446 = vmatpush.msra.mxu2 %v697_v35  ;;  %1382 = vmatpush.msra.mxu1 %v680_v57  ;;  %v426_v35 = vld [vmem:[%s2565_s28 + $0x4b8] sm:$0xff]  ;;  %v708_v57 = vld [vmem:[%s2572_s24 + $0x588] sm:$0xff] }
 0x109   : > { %1131 = vmatmul.f32.gmra.mxu1 %v296_v36 }
 0x10a   : > { %1261 = vmatmul.f32.gmra.mxu3 %v298_v37  ;;  %v937_v40 = vpop.f32.mrf.mxu2 }
 0x10b   : > { %v938_v43 = vadd.f32 %v937_v40, %v873_v39  ;;  %v713_v39 = vld [vmem:[%s2572_s24 + $0x5b0] sm:$0xff] }
 0x10c   : > { %v810_v45 = vpop.f32.mrf.mxu0  ;;  %1511 = vmatpush.msra.mxu3 %v713_v39  ;;  %v661_v39 = vld [vmem:[%s2572_s24 + $0x410] sm:$0xff] }
 0x10d   : > { %v1002_v48 = vpop.f32.mrf.mxu3 }
 0x10e   : > { %v2828_v49 = vadd.f32 %v1002_v48, %v938_v43  ;;  %v875_v50 = vpop.f32.mrf.mxu1  ;;  %v375_v43 = vld [vmem:[%s2565_s28 + $0x320] sm:$0xff]  ;;  %v376_v48 = vld [vmem:[%s2565_s28 + $0x328] sm:$0xff] }
 0x10f   : > { %1069 = vmatmul.f32.gmra.mxu0 %v311_v46  ;;  %1199 = vmatmul.f32.gmra.mxu2 %v313_v47  ;;  %v876_v54 = vadd.f32 %v875_v50, %v810_v45  ;;  %v378_v50 = vld [vmem:[%s2565_s28 + $0x338] sm:$0xff] }
 0x111   : > { %1134 = vmatmul.f32.gmra.mxu1 %v312_v51  ;;  %v696_v51 = vld [vmem:[%s2572_s24 + $0x528] sm:$0xff] }
 0x112   : > { %1264 = vmatmul.f32.gmra.mxu3 %v314_v52  ;;  %v940_v55 = vpop.f32.mrf.mxu2  ;;  %1447 = vmatpush.msra.mxu2 %v696_v51  ;;  %v440_v51 = vld [vmem:[%s2565_s28 + $0x528] sm:$0xff] }
 0x113   : > { %v941_v58 = vadd.f32 %v940_v55, %v876_v54  ;;  %v664_v54 = vld [vmem:[%s2572_s24 + $0x428] sm:$0xff] }
 0x114   : > { %v813_v60 = vpop.f32.mrf.mxu0  ;;  %v712_v55 = vld [vmem:[%s2572_s24 + $0x5a8] sm:$0xff]  ;;  %1317 = vmatpush.msra.mxu0 %v664_v54 }
 0x115   : > { %v1005_v63 = vpop.f32.mrf.mxu3  ;;  %1512 = vmatpush.msra.mxu3 %v712_v55 }
 0x116   : > { %v2838_v0 = vadd.f32 %v1005_v63, %v941_v58  ;;  %v878_v1 = vpop.f32.mrf.mxu1 }
 0x117   : > { %1072 = vmatmul.f32.gmra.mxu0 %v327_v61  ;;  %1202 = vmatmul.f32.gmra.mxu2 %v329_v62  ;;  %v879_v5 = vadd.f32 %v878_v1, %v813_v60  ;;  %v393_v60 = vld [vmem:[%s2565_s28 + $0x3b0] sm:$0xff]  ;;  %v392_v1 = vld [vmem:[%s2565_s28 + $0x3a8] sm:$0xff] }
 0x118   : > { %1513 = vmatpush.msra.mxu3 %v711_v7 }
 0x119   : > { %1137 = vmatmul.f32.gmra.mxu1 %v328_v2  ;;  %v394_v2 = vld [vmem:[%s2565_s28 + $0x3b8] sm:$0xff] }
 0x11a   : > { %1267 = vmatmul.f32.gmra.mxu3 %v330_v3  ;;  %v943_v6 = vpop.f32.mrf.mxu2  ;;  %v695_v3 = vld [vmem:[%s2572_s24 + $0x520] sm:$0xff] }
 0x11b   : > { %v944_v9 = vadd.f32 %v943_v6, %v879_v5  ;;  %1448 = vmatpush.msra.mxu2 %v695_v3  ;;  %v663_v6 = vld [vmem:[%s2572_s24 + $0x420] sm:$0xff]  ;;  %1514 = vmatpush.msra.mxu3 %v710_v23  ;;  %v770_v23 = vld [vmem:[%s2572_s24 + $0x778] sm:$0xff] }
 0x11c   : > { %v816_v11 = vpop.f32.mrf.mxu0  ;;  %1318 = vmatpush.msra.mxu0 %v663_v6  ;;  %v691_v6 = vld [vmem:[%s2572_s24 + $0x500] sm:$0xff] }
 0x11d   : > { %v1008_v14 = vpop.f32.mrf.mxu3  ;;  %1449 = vmatpush.msra.mxu2 %v694_v19 }
 0x11e   : > { %v2848_v15 = vadd.f32 %v1008_v14, %v944_v9  ;;  %v881_v16 = vpop.f32.mrf.mxu1  ;;  %v679_v9 = vld [vmem:[%s2572_s24 + $0x4a0] sm:$0xff]  ;;  %1319 = vmatpush.msra.mxu0 %v662_v22  ;;  %v474_v22 = vld [vmem:[%s2565_s28 + $0x638] sm:$0xff] }
 0x11f   : > { %1075 = vmatmul.f32.gmra.mxu0 %v343_v12  ;;  %1205 = vmatmul.f32.gmra.mxu2 %v345_v13  ;;  %v882_v20 = vadd.f32 %v881_v16, %v816_v11  ;;  %v407_v11 = vld [vmem:[%s2565_s28 + $0x420] sm:$0xff]  ;;  %v409_v12 = vld [vmem:[%s2565_s28 + $0x430] sm:$0xff] }
 0x120   : > { %1383 = vmatpush.msra.mxu1 %v679_v9  ;;  %1320 = vmatpush.msra.mxu0 %v661_v39  ;;  %v659_v9 = vld [vmem:[%s2572_s24 + $0x400] sm:$0xff]  ;;  %v488_v39 = vld [vmem:[%s2565_s28 + $0x6a8] sm:$0xff] }
 0x121   : > { %1140 = vmatmul.f32.gmra.mxu1 %v344_v17  ;;  %v408_v17 = vld [vmem:[%s2565_s28 + $0x428] sm:$0xff] }
 0x122   : > { %1270 = vmatmul.f32.gmra.mxu3 %v346_v18  ;;  %v946_v21 = vpop.f32.mrf.mxu2  ;;  %v410_v18 = vld [vmem:[%s2565_s28 + $0x438] sm:$0xff]  ;;  %1384 = vmatpush.msra.mxu1 %v678_v25 }
 0x123   : > { %v947_v24 = vadd.f32 %v946_v21, %v882_v20 }
 0x124   : > { %v819_v26 = vpop.f32.mrf.mxu0 }
 0x125   : > { %v1011_v29 = vpop.f32.mrf.mxu3 }
 0x126   : > { %v2858_v30 = vadd.f32 %v1011_v29, %v947_v24  ;;  %v884_v31 = vpop.f32.mrf.mxu1 }
 0x127   : > { %1078 = vmatmul.f32.gmra.mxu0 %v359_v27  ;;  %1208 = vmatmul.f32.gmra.mxu2 %v361_v28  ;;  %v885_v36 = vadd.f32 %v884_v31, %v819_v26  ;;  %v423_v27 = vld [vmem:[%s2565_s28 + $0x4a0] sm:$0xff]  ;;  %v425_v28 = vld [vmem:[%s2565_s28 + $0x4b0] sm:$0xff] }
 0x129   : > { %1143 = vmatmul.f32.gmra.mxu1 %v360_v32 }
 0x12a   : > { %1273 = vmatmul.f32.gmra.mxu3 %v362_v33  ;;  %v949_v37 = vpop.f32.mrf.mxu2  ;;  %v424_v33 = vld [vmem:[%s2565_s28 + $0x4a8] sm:$0xff] }
 0x12b   : > { %v950_v40 = vadd.f32 %v949_v37, %v885_v36  ;;  %v693_v36 = vld [vmem:[%s2572_s24 + $0x510] sm:$0xff] }
 0x12c   : > { %v822_v42 = vpop.f32.mrf.mxu0  ;;  %1450 = vmatpush.msra.mxu2 %v693_v36 }
 0x12d   : > { %v1014_v45 = vpop.f32.mrf.mxu3 }
 0x12e   : > { %v2868_v46 = vadd.f32 %v1014_v45, %v950_v40  ;;  %v887_v47 = vpop.f32.mrf.mxu1  ;;  %v709_v40 = vld [vmem:[%s2572_s24 + $0x590] sm:$0xff] }
 0x12f   : > { %1081 = vmatmul.f32.gmra.mxu0 %v375_v43  ;;  %1211 = vmatmul.f32.gmra.mxu2 %v377_v44  ;;  %v888_v52 = vadd.f32 %v887_v47, %v822_v42  ;;  %v677_v42 = vld [vmem:[%s2572_s24 + $0x490] sm:$0xff]  ;;  %v439_v44 = vld [vmem:[%s2565_s28 + $0x520] sm:$0xff] }
 0x130   : > { %1515 = vmatpush.msra.mxu3 %v709_v40  ;;  %v441_v45 = vld [vmem:[%s2565_s28 + $0x530] sm:$0xff]  ;;  %1385 = vmatpush.msra.mxu1 %v677_v42  ;;  %v490_v40 = vld [vmem:[%s2565_s28 + $0x6b8] sm:$0xff] }
 0x131   : > { %1146 = vmatmul.f32.gmra.mxu1 %v376_v48 }
 0x132   : > { %1276 = vmatmul.f32.gmra.mxu3 %v378_v50  ;;  %v952_v53 = vpop.f32.mrf.mxu2 }
 0x133   : > { %v953_v56 = vadd.f32 %v952_v53, %v888_v52  ;;  %v442_v52 = vld [vmem:[%s2565_s28 + $0x538] sm:$0xff]  ;;  %v692_v53 = vld [vmem:[%s2572_s24 + $0x508] sm:$0xff]  ;;  %1516 = vmatpush.msra.mxu3 %v708_v57 }
 0x134   : > { %v825_v58 = vpop.f32.mrf.mxu0  ;;  %1451 = vmatpush.msra.mxu2 %v692_v53  ;;  %v505_v53 = vld [vmem:[%s2565_s28 + $0x730] sm:$0xff]  ;;  %v504_v57 = vld [vmem:[%s2565_s28 + $0x728] sm:$0xff] }
 0x135   : > { %v1017_v61 = vpop.f32.mrf.mxu3 }
 0x136   : > { %v2878_v62 = vadd.f32 %v1017_v61, %v953_v56  ;;  %v890_v63 = vpop.f32.mrf.mxu1  ;;  %v660_v56 = vld [vmem:[%s2572_s24 + $0x408] sm:$0xff]  ;;  %v455_v61 = vld [vmem:[%s2565_s28 + $0x5a0] sm:$0xff]  ;;  %1452 = vmatpush.msra.mxu2 %v691_v6 }
 0x137   : > { %1084 = vmatmul.f32.gmra.mxu0 %v391_v59  ;;  %1214 = vmatmul.f32.gmra.mxu2 %v393_v60  ;;  %v891_v4 = vadd.f32 %v890_v63, %v825_v58  ;;  %v676_v59 = vld [vmem:[%s2572_s24 + $0x488] sm:$0xff]  ;;  %v457_v63 = vld [vmem:[%s2565_s28 + $0x5b0] sm:$0xff]  ;;  %v519_v6 = vld [vmem:[%s2565_s28 + $0x7a0] sm:$0xff] }
 0x138   : > { %1321 = vmatpush.msra.mxu0 %v660_v56  ;;  %1386 = vmatpush.msra.mxu1 %v676_v59  ;;  %v768_v59 = vld [vmem:[%s2572_s24 + $0x768] sm:$0xff] }
 0x139   : > { %1149 = vmatmul.f32.gmra.mxu1 %v392_v1  ;;  %1697 = vmatpush.msrb.mxu2 %v770_v23 }
 0x13a   : > { %1279 = vmatmul.f32.gmra.mxu3 %v394_v2  ;;  %v955_v5 = vpop.f32.mrf.mxu2  ;;  %1322 = vmatpush.msra.mxu0 %v659_v9 }
 0x13b   : > { %v956_v8 = vadd.f32 %v955_v5, %v891_v4  ;;  %v456_v4 = vld [vmem:[%s2565_s28 + $0x5a8] sm:$0xff]  ;;  %v458_v5 = vld [vmem:[%s2565_s28 + $0x5b8] sm:$0xff] }
 0x13c   : > { %v828_v10 = vpop.f32.mrf.mxu0 }
 0x13d   : > { %v1020_v13 = vpop.f32.mrf.mxu3 }
 0x13e   : > { %v2888_v14 = vadd.f32 %v1020_v13, %v956_v8  ;;  %v893_v16 = vpop.f32.mrf.mxu1 }
 0x13f   : > { %1087 = vmatmul.f32.gmra.mxu0 %v407_v11  ;;  %1217 = vmatmul.f32.gmra.mxu2 %v409_v12  ;;  %v894_v20 = vadd.f32 %v893_v16, %v828_v10  ;;  %v707_v10 = vld [vmem:[%s2572_s24 + $0x580] sm:$0xff] }
 0x140   : > { %1517 = vmatpush.msra.mxu3 %v707_v10  ;;  %v675_v12 = vld [vmem:[%s2572_s24 + $0x480] sm:$0xff] }
 0x141   : > { %1152 = vmatmul.f32.gmra.mxu1 %v408_v17  ;;  %v471_v16 = vld [vmem:[%s2565_s28 + $0x620] sm:$0xff]  ;;  %v473_v17 = vld [vmem:[%s2565_s28 + $0x630] sm:$0xff] }
 0x142   : > { %1282 = vmatmul.f32.gmra.mxu3 %v410_v18  ;;  %v958_v21 = vpop.f32.mrf.mxu2  ;;  %1387 = vmatpush.msra.mxu1 %v675_v12  ;;  %v522_v12 = vld [vmem:[%s2565_s28 + $0x7b8] sm:$0xff] }
 0x143   : > { %v959_v24 = vadd.f32 %v958_v21, %v894_v20  ;;  %v472_v21 = vld [vmem:[%s2565_s28 + $0x628] sm:$0xff] }
 0x144   : > { %v831_v26 = vpop.f32.mrf.mxu0 }
 0x145   : > { %v1023_v29 = vpop.f32.mrf.mxu3 }
 0x146   : > { %v2898_v31 = vadd.f32 %v1023_v29, %v959_v24  ;;  %v896_v32 = vpop.f32.mrf.mxu1  ;;  %v754_v29 = vld [vmem:[%s2572_s24 + $0x6f8] sm:$0xff] }
 0x147   : > { %1090 = vmatmul.f32.gmra.mxu0 %v423_v27  ;;  %1220 = vmatmul.f32.gmra.mxu2 %v425_v28  ;;  %v897_v37 = vadd.f32 %v896_v32, %v831_v26  ;;  %v738_v26 = vld [vmem:[%s2572_s24 + $0x678] sm:$0xff] }
 0x148   : > { %v786_v27 = vld [vmem:[%s2572_s24 + $0x7f8] sm:$0xff]  ;;  %1567 = vmatpush.msrb.mxu0 %v738_v26  ;;  %1632 = vmatpush.msrb.mxu1 %v754_v29 }
 0x149   : > { %1155 = vmatmul.f32.gmra.mxu1 %v424_v33  ;;  %1762 = vmatpush.msrb.mxu3 %v786_v27  ;;  %v487_v33 = vld [vmem:[%s2565_s28 + $0x6a0] sm:$0xff] }
 0x14a   : > { %1285 = vmatmul.f32.gmra.mxu3 %v426_v35  ;;  %v961_v38 = vpop.f32.mrf.mxu2  ;;  %v489_v35 = vld [vmem:[%s2565_s28 + $0x6b0] sm:$0xff] }
 0x14b   : > { %v962_v41 = vadd.f32 %v961_v38, %v897_v37 }
 0x14c   : > { %v834_v43 = vpop.f32.mrf.mxu0 }
 0x14d   : > { %v1026_v47 = vpop.f32.mrf.mxu3 }
 0x14e   : > { %v2908_v48 = vadd.f32 %v1026_v47, %v962_v41  ;;  %v899_v50 = vpop.f32.mrf.mxu1  ;;  %v769_v41 = vld [vmem:[%s2572_s24 + $0x770] sm:$0xff] }
 0x14f   : > { %1093 = vmatmul.f32.gmra.mxu0 %v439_v44  ;;  %1223 = vmatmul.f32.gmra.mxu2 %v441_v45  ;;  %v900_v54 = vadd.f32 %v899_v50, %v834_v43  ;;  %v737_v44 = vld [vmem:[%s2572_s24 + $0x670] sm:$0xff] }
 0x150   : > { %1698 = vmatpush.msrb.mxu2 %v769_v41  ;;  %v785_v45 = vld [vmem:[%s2572_s24 + $0x7f0] sm:$0xff]  ;;  %1568 = vmatpush.msrb.mxu0 %v737_v44  ;;  %v750_v41 = vld [vmem:[%s2572_s24 + $0x6d8] sm:$0xff] }
 0x151   : > { %1158 = vmatmul.f32.gmra.mxu1 %v440_v51  ;;  %1763 = vmatpush.msrb.mxu3 %v785_v45  ;;  %v753_v50 = vld [vmem:[%s2572_s24 + $0x6f0] sm:$0xff] }
 0x152   : > { %1288 = vmatmul.f32.gmra.mxu3 %v442_v52  ;;  %v964_v55 = vpop.f32.mrf.mxu2  ;;  %v503_v52 = vld [vmem:[%s2565_s28 + $0x720] sm:$0xff]  ;;  %1633 = vmatpush.msrb.mxu1 %v753_v50  ;;  %v301_v44 = vld [vmem:[%s2565_s28 + $0xd0] sm:$0xff] }
 0x153   : > { %v965_v58 = vadd.f32 %v964_v55, %v900_v54  ;;  %1699 = vmatpush.msrb.mxu2 %v768_v59 }
 0x154   : > { %v837_v60 = vpop.f32.mrf.mxu0 }
 0x155   : > { %v1029_v1 = vpop.f32.mrf.mxu3 }
 0x156   : > { %v2918_v2 = vadd.f32 %v1029_v1, %v965_v58  ;;  %v902_v3 = vpop.f32.mrf.mxu1  ;;  %v506_v58 = vld [vmem:[%s2565_s28 + $0x738] sm:$0xff]  ;;  %v784_v1 = vld [vmem:[%s2572_s24 + $0x7e8] sm:$0xff] }
 0x157   : > { %1096 = vmatmul.f32.gmra.mxu0 %v455_v61  ;;  %1226 = vmatmul.f32.gmra.mxu2 %v457_v63  ;;  %v903_v7 = vadd.f32 %v902_v3, %v837_v60  ;;  %v736_v63 = vld [vmem:[%s2572_s24 + $0x668] sm:$0xff] }
 0x158   : > { %1569 = vmatpush.msrb.mxu0 %v736_v63  ;;  %1764 = vmatpush.msrb.mxu3 %v784_v1  ;;  %v315_v63 = vld [vmem:[%s2565_s28 + $0x140] sm:$0xff]  ;;  %v317_v1 = vld [vmem:[%s2565_s28 + $0x150] sm:$0xff] }
 0x159   : > { %1161 = vmatmul.f32.gmra.mxu1 %v456_v4  ;;  %v752_v4 = vld [vmem:[%s2572_s24 + $0x6e8] sm:$0xff] }
 0x15a   : > { %1291 = vmatmul.f32.gmra.mxu3 %v458_v5  ;;  %v967_v8 = vpop.f32.mrf.mxu2  ;;  %1634 = vmatpush.msrb.mxu1 %v752_v4 }
 0x15b   : > { %v968_v11 = vadd.f32 %v967_v8, %v903_v7  ;;  %v521_v7 = vld [vmem:[%s2565_s28 + $0x7b0] sm:$0xff] }
 0x15c   : > { %v840_v13 = vpop.f32.mrf.mxu0 }
 0x15d   : > { %v1032_v18 = vpop.f32.mrf.mxu3 }
 0x15e   : > { %v2928_v19 = vadd.f32 %v1032_v18, %v968_v11  ;;  %v905_v20 = vpop.f32.mrf.mxu1  ;;  %v520_v11 = vld [vmem:[%s2565_s28 + $0x7a8] sm:$0xff]  ;;  %v735_v18 = vld [vmem:[%s2572_s24 + $0x660] sm:$0xff] }
 0x15f   : > { %1099 = vmatmul.f32.gmra.mxu0 %v471_v16  ;;  %1229 = vmatmul.f32.gmra.mxu2 %v473_v17  ;;  %v906_v24 = vadd.f32 %v905_v20, %v840_v13  ;;  %v767_v13 = vld [vmem:[%s2572_s24 + $0x760] sm:$0xff] }
 0x160   : > { %1700 = vmatpush.msrb.mxu2 %v767_v13  ;;  %v783_v20 = vld [vmem:[%s2572_s24 + $0x7e0] sm:$0xff]  ;;  %1570 = vmatpush.msrb.mxu0 %v735_v18  ;;  %v732_v13 = vld [vmem:[%s2572_s24 + $0x648] sm:$0xff] }
 0x161   : > { %1164 = vmatmul.f32.gmra.mxu1 %v472_v21  ;;  %1765 = vmatpush.msrb.mxu3 %v783_v20  ;;  %v331_v20 = vld [vmem:[%s2565_s28 + $0x1c0] sm:$0xff] }
 0x162   : > { %1294 = vmatmul.f32.gmra.mxu3 %v474_v22  ;;  %v970_v25 = vpop.f32.mrf.mxu2  ;;  %v751_v22 = vld [vmem:[%s2572_s24 + $0x6e0] sm:$0xff] }
 0x163   : > { %v971_v28 = vadd.f32 %v970_v25, %v906_v24  ;;  %v283_v24 = vld [vmem:[%s2565_s28 + $0x40] sm:$0xff]  ;;  %v285_v25 = vld [vmem:[%s2565_s28 + $0x50] sm:$0xff]  ;;  %1635 = vmatpush.msrb.mxu1 %v751_v22 }
 0x164   : > { %v843_v32 = vpop.f32.mrf.mxu0 }
 0x165   : > { %v1035_v36 = vpop.f32.mrf.mxu3  ;;  %1636 = vmatpush.msrb.mxu1 %v750_v41 }
 0x166   : > { %v2938_v37 = vadd.f32 %v1035_v36, %v971_v28  ;;  %v908_v38 = vpop.f32.mrf.mxu1 }
 0x167   : > { %1102 = vmatmul.f32.gmra.mxu0 %v487_v33  ;;  %1232 = vmatmul.f32.gmra.mxu2 %v489_v35  ;;  %v909_v42 = vadd.f32 %v908_v38, %v843_v32  ;;  %v284_v32 = vld [vmem:[%s2565_s28 + $0x48] sm:$0xff]  ;;  %v286_v33 = vld [vmem:[%s2565_s28 + $0x58] sm:$0xff] }
 0x168   : > { %v766_v35 = vld [vmem:[%s2572_s24 + $0x758] sm:$0xff] }
 0x169   : > { %1167 = vmatmul.f32.gmra.mxu1 %v488_v39  ;;  %1701 = vmatpush.msrb.mxu2 %v766_v35  ;;  %v734_v39 = vld [vmem:[%s2572_s24 + $0x658] sm:$0xff]  ;;  %v731_v35 = vld [vmem:[%s2572_s24 + $0x640] sm:$0xff] }
 0x16a   : > { %1297 = vmatmul.f32.gmra.mxu3 %v490_v40  ;;  %v973_v43 = vpop.f32.mrf.mxu2  ;;  %v782_v40 = vld [vmem:[%s2572_s24 + $0x7d8] sm:$0xff]  ;;  %1571 = vmatpush.msrb.mxu0 %v734_v39 }
 0x16b   : > { %v974_v47 = vadd.f32 %v973_v43, %v909_v42  ;;  %1766 = vmatpush.msrb.mxu3 %v782_v40  ;;  %v299_v43 = vld [vmem:[%s2565_s28 + $0xc0] sm:$0xff] }
 0x16c   : > { %v846_v51 = vpop.f32.mrf.mxu0  ;;  %v347_v40 = vld [vmem:[%s2565_s28 + $0x240] sm:$0xff] }
 0x16d   : > { %v1038_v54 = vpop.f32.mrf.mxu3 }
 0x16e   : > { %v2948_v55 = vadd.f32 %v1038_v54, %v974_v47  ;;  %v911_v56 = vpop.f32.mrf.mxu1  ;;  %v765_v54 = vld [vmem:[%s2572_s24 + $0x750] sm:$0xff] }
 0x16f   : > { %1105 = vmatmul.f32.gmra.mxu0 %v503_v52  ;;  %1235 = vmatmul.f32.gmra.mxu2 %v505_v53  ;;  %v912_v60 = vadd.f32 %v911_v56, %v846_v51  ;;  %v300_v52 = vld [vmem:[%s2565_s28 + $0xc8] sm:$0xff]  ;;  %v302_v53 = vld [vmem:[%s2565_s28 + $0xd8] sm:$0xff] }
 0x170   : > { %1702 = vmatpush.msrb.mxu2 %v765_v54  ;;  %v730_v54 = vld [vmem:[%s2572_s24 + $0x638] sm:$0xff] }
 0x171   : > { %1170 = vmatmul.f32.gmra.mxu1 %v504_v57 }
 0x172   : > { %1300 = vmatmul.f32.gmra.mxu3 %v506_v58  ;;  %v976_v61 = vpop.f32.mrf.mxu2  ;;  %v733_v58 = vld [vmem:[%s2572_s24 + $0x650] sm:$0xff] }
 0x173   : > { %v977_v3 = vadd.f32 %v976_v61, %v912_v60  ;;  %1572 = vmatpush.msrb.mxu0 %v733_v58  ;;  %v749_v60 = vld [vmem:[%s2572_s24 + $0x6d0] sm:$0xff] }
 0x174   : > { %v849_v5 = vpop.f32.mrf.mxu0  ;;  %1637 = vmatpush.msrb.mxu1 %v749_v60 }
 0x175   : > { %v1041_v8 = vpop.f32.mrf.mxu3  ;;  %1573 = vmatpush.msrb.mxu0 %v732_v13 }
 0x176   : > { %v2958_v9 = vadd.f32 %v1041_v8, %v977_v3  ;;  %v914_v10 = vpop.f32.mrf.mxu1  ;;  %v318_v8 = vld [vmem:[%s2565_s28 + $0x158] sm:$0xff] }
 0x177   : > { %1108 = vmatmul.f32.gmra.mxu0 %v519_v6  ;;  %1238 = vmatmul.f32.gmra.mxu2 %v521_v7  ;;  %v915_v16 = vadd.f32 %v914_v10, %v849_v5  ;;  %v316_v7 = vld [vmem:[%s2565_s28 + $0x148] sm:$0xff] }
 0x178   : > { %v764_v10 = vld [vmem:[%s2572_s24 + $0x748] sm:$0xff]  ;;  %1574 = vmatpush.msrb.mxu0 %v731_v35 }
 0x179   : > { %1173 = vmatmul.f32.gmra.mxu1 %v520_v11  ;;  %1703 = vmatpush.msrb.mxu2 %v764_v10  ;;  %v729_v10 = vld [vmem:[%s2572_s24 + $0x630] sm:$0xff] }
 0x17a   : > { %1303 = vmatmul.f32.gmra.mxu3 %v522_v12  ;;  %v979_v17 = vpop.f32.mrf.mxu2  ;;  %1575 = vmatpush.msrb.mxu0 %v730_v54 }
 0x17b   : > { %v980_v21 = vadd.f32 %v979_v17, %v915_v16  ;;  %v748_v17 = vld [vmem:[%s2572_s24 + $0x6c8] sm:$0xff] }
 0x17c   : > { %v1064_v23 = vpop.f32.mrf.mxu0  ;;  %1638 = vmatpush.msrb.mxu1 %v748_v17  ;;  %1576 = vmatpush.msrb.mxu0 %v729_v10 }
 0x17d   : > { %v1044_v26 = vpop.f32.mrf.mxu3  ;;  %v1065_v27 = vadd.f32 %v1064_v23, %v2818_v34 }
 0x17e   : > { %v2969_v28 = vadd.f32 %v1044_v26, %v980_v21  ;;  %v1129_v29 = vpop.f32.mrf.mxu1  ;;  %v333_v21 = vld [vmem:[%s2565_s28 + $0x1d0] sm:$0xff]  ;;  %v332_v26 = vld [vmem:[%s2565_s28 + $0x1c8] sm:$0xff] }
 0x17f   : > { %1323 = vmatmul.f32.vlgmr.msra.gmra.mxu0 %v283_v24  ;;  %1453 = vmatmul.f32.vlgmr.msra.gmra.mxu2 %v285_v25  ;;  %v1130_v36 = vadd.f32 %v1129_v29, %v1065_v27  ;;  %v334_v27 = vld [vmem:[%s2565_s28 + $0x1d8] sm:$0xff]  ;;  %v763_v29 = vld [vmem:[%s2572_s24 + $0x740] sm:$0xff] }
 0x180   : > { %1704 = vmatpush.msrb.mxu2 %v763_v29  ;;  %v728_v29 = vld [vmem:[%s2572_s24 + $0x628] sm:$0xff] }
 0x181   : > { %1388 = vmatmul.f32.vlgmr.msra.gmra.mxu1 %v284_v32  ;;  %1577 = vmatpush.msrb.mxu0 %v728_v29 }
 0x182   : > { %1518 = vmatmul.f32.vlgmr.msra.gmra.mxu3 %v286_v33  ;;  %v1194_v38 = vpop.f32.mrf.mxu2 }
 0x183   : > { %v1195_v34 = vadd.f32 %v1194_v38, %v1130_v36  ;;  %v747_v38 = vld [vmem:[%s2572_s24 + $0x6c0] sm:$0xff] }
 0x184   : > { %v1067_v42 = vpop.f32.mrf.mxu0  ;;  %1639 = vmatpush.msrb.mxu1 %v747_v38 }
 0x185   : > { %v1068_v45 = vadd.f32 %v1067_v42, %v2828_v49  ;;  %v1259_v47 = vpop.f32.mrf.mxu3  ;;  %v781_v49 = vld [vmem:[%s2572_s24 + $0x7d0] sm:$0xff] }
 0x186   : > { %v2980_v50 = vadd.f32 %v1259_v47, %v1195_v34  ;;  %v1132_v51 = vpop.f32.mrf.mxu1  ;;  %1767 = vmatpush.msrb.mxu3 %v781_v49  ;;  %v349_v34 = vld [vmem:[%s2565_s28 + $0x250] sm:$0xff]  ;;  %v350_v47 = vld [vmem:[%s2565_s28 + $0x258] sm:$0xff]  ;;  %v363_v49 = vld [vmem:[%s2565_s28 + $0x2c0] sm:$0xff] }
 0x187   : > { %1326 = vmatmul.f32.gmra.mxu0 %v299_v43  ;;  %1456 = vmatmul.f32.gmra.mxu2 %v301_v44  ;;  %v1133_v56 = vadd.f32 %v1132_v51, %v1068_v45  ;;  %v348_v45 = vld [vmem:[%s2565_s28 + $0x248] sm:$0xff]  ;;  %v762_v51 = vld [vmem:[%s2572_s24 + $0x738] sm:$0xff] }
 0x188   : > { %1705 = vmatpush.msrb.mxu2 %v762_v51  ;;  %v727_v51 = vld [vmem:[%s2572_s24 + $0x620] sm:$0xff] }
 0x189   : > { %1391 = vmatmul.f32.gmra.mxu1 %v300_v52  ;;  %1578 = vmatpush.msrb.mxu0 %v727_v51 }
 0x18a   : > { %1521 = vmatmul.f32.gmra.mxu3 %v302_v53  ;;  %v1197_v57 = vpop.f32.mrf.mxu2 }
 0x18b   : > { %v1198_v59 = vadd.f32 %v1197_v57, %v1133_v56  ;;  %v746_v57 = vld [vmem:[%s2572_s24 + $0x6b8] sm:$0xff] }
 0x18c   : > { %v1070_v61 = vpop.f32.mrf.mxu0  ;;  %1640 = vmatpush.msrb.mxu1 %v746_v57 }
 0x18d   : > { %v1071_v3 = vadd.f32 %v1070_v61, %v2838_v0  ;;  %v1262_v4 = vpop.f32.mrf.mxu3  ;;  %v780_v0 = vld [vmem:[%s2572_s24 + $0x7c8] sm:$0xff] }
 0x18e   : > { %v2991_v5 = vadd.f32 %v1262_v4, %v1198_v59  ;;  %v1135_v6 = vpop.f32.mrf.mxu1  ;;  %1768 = vmatpush.msrb.mxu3 %v780_v0  ;;  %v365_v59 = vld [vmem:[%s2565_s28 + $0x2d0] sm:$0xff]  ;;  %v366_v4 = vld [vmem:[%s2565_s28 + $0x2d8] sm:$0xff]  ;;  %v379_v0 = vld [vmem:[%s2565_s28 + $0x340] sm:$0xff] }
 0x18f   : > { %1329 = vmatmul.f32.gmra.mxu0 %v315_v63  ;;  %1459 = vmatmul.f32.gmra.mxu2 %v317_v1  ;;  %v1136_v11 = vadd.f32 %v1135_v6, %v1071_v3  ;;  %v364_v3 = vld [vmem:[%s2565_s28 + $0x2c8] sm:$0xff]  ;;  %v761_v6 = vld [vmem:[%s2572_s24 + $0x730] sm:$0xff] }
 0x190   : > { %1706 = vmatpush.msrb.mxu2 %v761_v6  ;;  %v726_v6 = vld [vmem:[%s2572_s24 + $0x618] sm:$0xff] }
 0x191   : > { %1394 = vmatmul.f32.gmra.mxu1 %v316_v7  ;;  %1579 = vmatpush.msrb.mxu0 %v726_v6 }
 0x192   : > { %1524 = vmatmul.f32.gmra.mxu3 %v318_v8  ;;  %v1200_v12 = vpop.f32.mrf.mxu2 }
 0x193   : > { %v1201_v16 = vadd.f32 %v1200_v12, %v1136_v11  ;;  %v745_v12 = vld [vmem:[%s2572_s24 + $0x6b0] sm:$0xff] }
 0x194   : > { %v1073_v18 = vpop.f32.mrf.mxu0  ;;  %1641 = vmatpush.msrb.mxu1 %v745_v12 }
 0x195   : > { %v1074_v22 = vadd.f32 %v1073_v18, %v2848_v15  ;;  %v1265_v23 = vpop.f32.mrf.mxu3  ;;  %v779_v15 = vld [vmem:[%s2572_s24 + $0x7c0] sm:$0xff] }
 0x196   : > { %v3002_v24 = vadd.f32 %v1265_v23, %v1201_v16  ;;  %v1138_v25 = vpop.f32.mrf.mxu1  ;;  %1769 = vmatpush.msrb.mxu3 %v779_v15  ;;  %v381_v16 = vld [vmem:[%s2565_s28 + $0x350] sm:$0xff]  ;;  %v382_v23 = vld [vmem:[%s2565_s28 + $0x358] sm:$0xff]  ;;  %v395_v15 = vld [vmem:[%s2565_s28 + $0x3c0] sm:$0xff] }
 0x197   : > { %1332 = vmatmul.f32.gmra.mxu0 %v331_v20  ;;  %1462 = vmatmul.f32.gmra.mxu2 %v333_v21  ;;  %v1139_v32 = vadd.f32 %v1138_v25, %v1074_v22  ;;  %v380_v22 = vld [vmem:[%s2565_s28 + $0x348] sm:$0xff] }
 0x198   : > { %v760_v25 = vld [vmem:[%s2572_s24 + $0x728] sm:$0xff] }
 0x199   : > { %1397 = vmatmul.f32.gmra.mxu1 %v332_v26  ;;  %1707 = vmatpush.msrb.mxu2 %v760_v25  ;;  %v725_v25 = vld [vmem:[%s2572_s24 + $0x610] sm:$0xff] }
 0x19a   : > { %1527 = vmatmul.f32.gmra.mxu3 %v334_v27  ;;  %v1203_v33 = vpop.f32.mrf.mxu2  ;;  %1580 = vmatpush.msrb.mxu0 %v725_v25 }
 0x19b   : > { %v1204_v36 = vadd.f32 %v1203_v33, %v1139_v32  ;;  %v744_v33 = vld [vmem:[%s2572_s24 + $0x6a8] sm:$0xff] }
 0x19c   : > { %v1076_v39 = vpop.f32.mrf.mxu0  ;;  %1642 = vmatpush.msrb.mxu1 %v744_v33 }
 0x19d   : > { %v1077_v41 = vadd.f32 %v1076_v39, %v2858_v30  ;;  %v1268_v42 = vpop.f32.mrf.mxu3  ;;  %v778_v30 = vld [vmem:[%s2572_s24 + $0x7b8] sm:$0xff] }
 0x19e   : > { %v3013_v43 = vadd.f32 %v1268_v42, %v1204_v36  ;;  %v1141_v44 = vpop.f32.mrf.mxu1  ;;  %1770 = vmatpush.msrb.mxu3 %v778_v30  ;;  %v397_v36 = vld [vmem:[%s2565_s28 + $0x3d0] sm:$0xff]  ;;  %v398_v42 = vld [vmem:[%s2565_s28 + $0x3d8] sm:$0xff]  ;;  %v411_v30 = vld [vmem:[%s2565_s28 + $0x440] sm:$0xff] }
 0x19f   : > { %1335 = vmatmul.f32.gmra.mxu0 %v347_v40  ;;  %1465 = vmatmul.f32.gmra.mxu2 %v349_v34  ;;  %v1142_v52 = vadd.f32 %v1141_v44, %v1077_v41  ;;  %v396_v41 = vld [vmem:[%s2565_s28 + $0x3c8] sm:$0xff]  ;;  %v759_v44 = vld [vmem:[%s2572_s24 + $0x720] sm:$0xff] }
 0x1a0   : > { %1708 = vmatpush.msrb.mxu2 %v759_v44  ;;  %v724_v44 = vld [vmem:[%s2572_s24 + $0x608] sm:$0xff] }
 0x1a1   : > { %1400 = vmatmul.f32.gmra.mxu1 %v348_v45  ;;  %1581 = vmatpush.msrb.mxu0 %v724_v44  ;;  %v510_v44 = vld [vmem:[%s2565_s28 + $0x758] sm:$0xff] }
 0x1a2   : > { %1530 = vmatmul.f32.gmra.mxu3 %v350_v47  ;;  %v1206_v53 = vpop.f32.mrf.mxu2 }
 0x1a3   : > { %v1207_v56 = vadd.f32 %v1206_v53, %v1142_v52  ;;  %v743_v53 = vld [vmem:[%s2572_s24 + $0x6a0] sm:$0xff] }
 0x1a4   : > { %v1079_v58 = vpop.f32.mrf.mxu0  ;;  %1643 = vmatpush.msrb.mxu1 %v743_v53 }
 0x1a5   : > { %v1080_v60 = vadd.f32 %v1079_v58, %v2868_v46  ;;  %v1271_v61 = vpop.f32.mrf.mxu3  ;;  %v777_v46 = vld [vmem:[%s2572_s24 + $0x7b0] sm:$0xff] }
 0x1a6   : > { %v3024_v63 = vadd.f32 %v1271_v61, %v1207_v56  ;;  %v1144_v1 = vpop.f32.mrf.mxu1  ;;  %1771 = vmatpush.msrb.mxu3 %v777_v46  ;;  %v413_v56 = vld [vmem:[%s2565_s28 + $0x450] sm:$0xff]  ;;  %v414_v61 = vld [vmem:[%s2565_s28 + $0x458] sm:$0xff]  ;;  %v427_v46 = vld [vmem:[%s2565_s28 + $0x4c0] sm:$0xff] }
 0x1a7   : > { %1338 = vmatmul.f32.gmra.mxu0 %v363_v49  ;;  %1468 = vmatmul.f32.gmra.mxu2 %v365_v59  ;;  %v1145_v7 = vadd.f32 %v1144_v1, %v1080_v60  ;;  %v412_v60 = vld [vmem:[%s2565_s28 + $0x448] sm:$0xff]  ;;  %v758_v1 = vld [vmem:[%s2572_s24 + $0x718] sm:$0xff] }
 0x1a8   : > { %1709 = vmatpush.msrb.mxu2 %v758_v1  ;;  %v723_v1 = vld [vmem:[%s2572_s24 + $0x600] sm:$0xff] }
 0x1a9   : > { %1403 = vmatmul.f32.gmra.mxu1 %v364_v3  ;;  %1582 = vmatpush.msrb.mxu0 %v723_v1 }
 0x1aa   : > { %1533 = vmatmul.f32.gmra.mxu3 %v366_v4  ;;  %v1209_v8 = vpop.f32.mrf.mxu2 }
 0x1ab   : > { %v1210_v11 = vadd.f32 %v1209_v8, %v1145_v7  ;;  %v742_v8 = vld [vmem:[%s2572_s24 + $0x698] sm:$0xff] }
 0x1ac   : > { %v1082_v13 = vpop.f32.mrf.mxu0  ;;  %1644 = vmatpush.msrb.mxu1 %v742_v8 }
 0x1ad   : > { %v1083_v17 = vadd.f32 %v1082_v13, %v2878_v62  ;;  %v1274_v18 = vpop.f32.mrf.mxu3  ;;  %v776_v62 = vld [vmem:[%s2572_s24 + $0x7a8] sm:$0xff] }
 0x1ae   : > { %v3035_v20 = vadd.f32 %v1274_v18, %v1210_v11  ;;  %v1147_v21 = vpop.f32.mrf.mxu1  ;;  %1772 = vmatpush.msrb.mxu3 %v776_v62  ;;  %v429_v11 = vld [vmem:[%s2565_s28 + $0x4d0] sm:$0xff]  ;;  %v430_v18 = vld [vmem:[%s2565_s28 + $0x4d8] sm:$0xff]  ;;  %v443_v62 = vld [vmem:[%s2565_s28 + $0x540] sm:$0xff] }
 0x1af   : > { %1341 = vmatmul.f32.gmra.mxu0 %v379_v0  ;;  %1471 = vmatmul.f32.gmra.mxu2 %v381_v16  ;;  %v1148_v26 = vadd.f32 %v1147_v21, %v1083_v17  ;;  %v428_v17 = vld [vmem:[%s2565_s28 + $0x4c8] sm:$0xff]  ;;  %v757_v21 = vld [vmem:[%s2572_s24 + $0x710] sm:$0xff] }
 0x1b0   : > { %1710 = vmatpush.msrb.mxu2 %v757_v21 }
 0x1b1   : > { %1406 = vmatmul.f32.gmra.mxu1 %v380_v22 }
 0x1b2   : > { %1536 = vmatmul.f32.gmra.mxu3 %v382_v23  ;;  %v1212_v27 = vpop.f32.mrf.mxu2 }
 0x1b3   : > { %v1213_v32 = vadd.f32 %v1212_v27, %v1148_v26  ;;  %v741_v27 = vld [vmem:[%s2572_s24 + $0x690] sm:$0xff] }
 0x1b4   : > { %v1085_v35 = vpop.f32.mrf.mxu0  ;;  %1645 = vmatpush.msrb.mxu1 %v741_v27  ;;  %v492_v27 = vld [vmem:[%s2565_s28 + $0x6c8] sm:$0xff] }
 0x1b5   : > { %v1086_v38 = vadd.f32 %v1085_v35, %v2888_v14  ;;  %v1277_v39 = vpop.f32.mrf.mxu3  ;;  %v775_v14 = vld [vmem:[%s2572_s24 + $0x7a0] sm:$0xff] }
 0x1b6   : > { %v3046_v40 = vadd.f32 %v1277_v39, %v1213_v32  ;;  %v1150_v34 = vpop.f32.mrf.mxu1  ;;  %1773 = vmatpush.msrb.mxu3 %v775_v14  ;;  %v445_v32 = vld [vmem:[%s2565_s28 + $0x550] sm:$0xff]  ;;  %v446_v39 = vld [vmem:[%s2565_s28 + $0x558] sm:$0xff]  ;;  %v459_v14 = vld [vmem:[%s2565_s28 + $0x5c0] sm:$0xff] }
 0x1b7   : > { %1344 = vmatmul.f32.gmra.mxu0 %v395_v15  ;;  %1474 = vmatmul.f32.gmra.mxu2 %v397_v36  ;;  %v1151_v45 = vadd.f32 %v1150_v34, %v1086_v38  ;;  %v444_v38 = vld [vmem:[%s2565_s28 + $0x548] sm:$0xff] }
 0x1b8   : > { %v756_v34 = vld [vmem:[%s2572_s24 + $0x708] sm:$0xff] }
 0x1b9   : > { %1409 = vmatmul.f32.gmra.mxu1 %v396_v41  ;;  %1711 = vmatpush.msrb.mxu2 %v756_v34 }
 0x1ba   : > { %1539 = vmatmul.f32.gmra.mxu3 %v398_v42  ;;  %v1215_v47 = vpop.f32.mrf.mxu2 }
 0x1bb   : > { %v1216_v52 = vadd.f32 %v1215_v47, %v1151_v45  ;;  %v740_v47 = vld [vmem:[%s2572_s24 + $0x688] sm:$0xff] }
 0x1bc   : > { %v1088_v54 = vpop.f32.mrf.mxu0  ;;  %1646 = vmatpush.msrb.mxu1 %v740_v47 }
 0x1bd   : > { %v1089_v57 = vadd.f32 %v1088_v54, %v2898_v31  ;;  %v1280_v58 = vpop.f32.mrf.mxu3  ;;  %v774_v31 = vld [vmem:[%s2572_s24 + $0x798] sm:$0xff] }
 0x1be   : > { %v3057_v49 = vadd.f32 %v1280_v58, %v1216_v52  ;;  %v1153_v59 = vpop.f32.mrf.mxu1  ;;  %1774 = vmatpush.msrb.mxu3 %v774_v31  ;;  %v461_v52 = vld [vmem:[%s2565_s28 + $0x5d0] sm:$0xff]  ;;  %v462_v58 = vld [vmem:[%s2565_s28 + $0x5d8] sm:$0xff]  ;;  %v475_v31 = vld [vmem:[%s2565_s28 + $0x640] sm:$0xff] }
 0x1bf   : > { %1347 = vmatmul.f32.gmra.mxu0 %v411_v30  ;;  %1477 = vmatmul.f32.gmra.mxu2 %v413_v56  ;;  %v1154_v3 = vadd.f32 %v1153_v59, %v1089_v57  ;;  %v460_v57 = vld [vmem:[%s2565_s28 + $0x5c8] sm:$0xff]  ;;  %v755_v59 = vld [vmem:[%s2572_s24 + $0x700] sm:$0xff] }
 0x1c0   : > { %1712 = vmatpush.msrb.mxu2 %v755_v59 }
 0x1c1   : > { %1412 = vmatmul.f32.gmra.mxu1 %v412_v60 }
 0x1c2   : > { %1542 = vmatmul.f32.gmra.mxu3 %v414_v61  ;;  %v1218_v4 = vpop.f32.mrf.mxu2 }
 0x1c3   : > { %v1219_v7 = vadd.f32 %v1218_v4, %v1154_v3  ;;  %v739_v4 = vld [vmem:[%s2572_s24 + $0x680] sm:$0xff] }
 0x1c4   : > { %v1091_v10 = vpop.f32.mrf.mxu0  ;;  %1647 = vmatpush.msrb.mxu1 %v739_v4 }
 0x1c5   : > { %v1092_v12 = vadd.f32 %v1091_v10, %v2908_v48  ;;  %v1283_v13 = vpop.f32.mrf.mxu3  ;;  %v773_v48 = vld [vmem:[%s2572_s24 + $0x790] sm:$0xff] }
 0x1c6   : > { %v3068_v0 = vadd.f32 %v1283_v13, %v1219_v7  ;;  %v1156_v16 = vpop.f32.mrf.mxu1  ;;  %1775 = vmatpush.msrb.mxu3 %v773_v48  ;;  %v477_v7 = vld [vmem:[%s2565_s28 + $0x650] sm:$0xff]  ;;  %v478_v13 = vld [vmem:[%s2565_s28 + $0x658] sm:$0xff] }
 0x1c7   : > { %1350 = vmatmul.f32.gmra.mxu0 %v427_v46  ;;  %1480 = vmatmul.f32.gmra.mxu2 %v429_v11  ;;  %v1157_v22 = vadd.f32 %v1156_v16, %v1092_v12  ;;  %v476_v12 = vld [vmem:[%s2565_s28 + $0x648] sm:$0xff] }
 0x1c9   : > { %1415 = vmatmul.f32.gmra.mxu1 %v428_v17 }
 0x1ca   : > { %1545 = vmatmul.f32.gmra.mxu3 %v430_v18  ;;  %v1221_v23 = vpop.f32.mrf.mxu2 }
 0x1cb   : > { %v1222_v26 = vadd.f32 %v1221_v23, %v1157_v22  ;;  %v491_v22 = vld [vmem:[%s2565_s28 + $0x6c0] sm:$0xff]  ;;  %v493_v23 = vld [vmem:[%s2565_s28 + $0x6d0] sm:$0xff] }
 0x1cc   : > { %v1094_v29 = vpop.f32.mrf.mxu0 }
 0x1cd   : > { %v1095_v33 = vadd.f32 %v1094_v29, %v2918_v2  ;;  %v1286_v35 = vpop.f32.mrf.mxu3  ;;  %v772_v2 = vld [vmem:[%s2572_s24 + $0x788] sm:$0xff]  ;;  %v494_v29 = vld [vmem:[%s2565_s28 + $0x6d8] sm:$0xff] }
 0x1ce   : > { %v3079_v15 = vadd.f32 %v1286_v35, %v1222_v26  ;;  %v1159_v36 = vpop.f32.mrf.mxu1  ;;  %1776 = vmatpush.msrb.mxu3 %v772_v2 }
 0x1cf   : > { %1353 = vmatmul.f32.gmra.mxu0 %v443_v62  ;;  %1483 = vmatmul.f32.gmra.mxu2 %v445_v32  ;;  %v1160_v41 = vadd.f32 %v1159_v36, %v1095_v33  ;;  %v507_v36 = vld [vmem:[%s2565_s28 + $0x740] sm:$0xff] }
 0x1d1   : > { %1418 = vmatmul.f32.gmra.mxu1 %v444_v38  ;;  %v509_v38 = vld [vmem:[%s2565_s28 + $0x750] sm:$0xff] }
 0x1d2   : > { %1548 = vmatmul.f32.gmra.mxu3 %v446_v39  ;;  %v1224_v42 = vpop.f32.mrf.mxu2 }
 0x1d3   : > { %v1225_v45 = vadd.f32 %v1224_v42, %v1160_v41  ;;  %v508_v42 = vld [vmem:[%s2565_s28 + $0x748] sm:$0xff] }
 0x1d4   : > { %v1097_v51 = vpop.f32.mrf.mxu0 }
 0x1d5   : > { %v1098_v53 = vadd.f32 %v1097_v51, %v2928_v19  ;;  %v1289_v54 = vpop.f32.mrf.mxu3  ;;  %v771_v19 = vld [vmem:[%s2572_s24 + $0x780] sm:$0xff] }
 0x1d6   : > { %v3090_v30 = vadd.f32 %v1289_v54, %v1225_v45  ;;  %v1162_v56 = vpop.f32.mrf.mxu1  ;;  %1777 = vmatpush.msrb.mxu3 %v771_v19  ;;  %v287_v19 = vld [vmem:[%s2565_s28 + $0x60] sm:$0xff] }
 0x1d7   : > { %1356 = vmatmul.f32.gmra.mxu0 %v459_v14  ;;  %1486 = vmatmul.f32.gmra.mxu2 %v461_v52  ;;  %v1163_v60 = vadd.f32 %v1162_v56, %v1098_v53  ;;  %v523_v14 = vld [vmem:[%s2565_s28 + $0x7c0] sm:$0xff]  ;;  %v525_v52 = vld [vmem:[%s2565_s28 + $0x7d0] sm:$0xff] }
 0x1d9   : > { %1421 = vmatmul.f32.gmra.mxu1 %v460_v57  ;;  %v524_v57 = vld [vmem:[%s2565_s28 + $0x7c8] sm:$0xff] }
 0x1da   : > { %1551 = vmatmul.f32.gmra.mxu3 %v462_v58  ;;  %v1227_v61 = vpop.f32.mrf.mxu2  ;;  %v526_v58 = vld [vmem:[%s2565_s28 + $0x7d8] sm:$0xff] }
 0x1db   : > { %v1228_v3 = vadd.f32 %v1227_v61, %v1163_v60 }
 0x1dc   : > { %v1100_v6 = vpop.f32.mrf.mxu0 }
 0x1dd   : > { %v1101_v8 = vadd.f32 %v1100_v6, %v2938_v37  ;;  %v1292_v10 = vpop.f32.mrf.mxu3 }
 0x1de   : > { %v3101_v46 = vadd.f32 %v1292_v10, %v1228_v3  ;;  %v1165_v11 = vpop.f32.mrf.mxu1  ;;  %v289_v3 = vld [vmem:[%s2565_s28 + $0x70] sm:$0xff] }
 0x1df   : > { %1359 = vmatmul.f32.gmra.mxu0 %v475_v31  ;;  %1489 = vmatmul.f32.gmra.mxu2 %v477_v7  ;;  %v1166_v16 = vadd.f32 %v1165_v11, %v1101_v8  ;;  %v288_v7 = vld [vmem:[%s2565_s28 + $0x68] sm:$0xff]  ;;  %v290_v8 = vld [vmem:[%s2565_s28 + $0x78] sm:$0xff] }
 0x1e1   : > { %1424 = vmatmul.f32.gmra.mxu1 %v476_v12 }
 0x1e2   : > { %1554 = vmatmul.f32.gmra.mxu3 %v478_v13  ;;  %v1230_v17 = vpop.f32.mrf.mxu2 }
 0x1e3   : > { %v1231_v18 = vadd.f32 %v1230_v17, %v1166_v16  ;;  %v303_v16 = vld [vmem:[%s2565_s28 + $0xe0] sm:$0xff]  ;;  %v305_v17 = vld [vmem:[%s2565_s28 + $0xf0] sm:$0xff] }
 0x1e4   : > { %v1103_v21 = vpop.f32.mrf.mxu0 }
 0x1e5   : > { %v1104_v37 = vadd.f32 %v1103_v21, %v2948_v55  ;;  %v1295_v25 = vpop.f32.mrf.mxu3 }
 0x1e6   : > { %v3108_v48 = vadd.f32 %v1295_v25, %v1231_v18  ;;  %v1168_v26 = vpop.f32.mrf.mxu1 }
 0x1e7   : > { %1362 = vmatmul.f32.gmra.mxu0 %v491_v22  ;;  %1492 = vmatmul.f32.gmra.mxu2 %v493_v23  ;;  %v1169_v62 = vadd.f32 %v1168_v26, %v1104_v37  ;;  %v304_v23 = vld [vmem:[%s2565_s28 + $0xe8] sm:$0xff]  ;;  %v306_v37 = vld [vmem:[%s2565_s28 + $0xf8] sm:$0xff] }
 0x1e9   : > { %1427 = vmatmul.f32.gmra.mxu1 %v492_v27 }
 0x1ea   : > { %1557 = vmatmul.f32.gmra.mxu3 %v494_v29  ;;  %v1233_v32 = vpop.f32.mrf.mxu2 }
 0x1eb   : > { %v1234_v33 = vadd.f32 %v1233_v32, %v1169_v62  ;;  %v319_v62 = vld [vmem:[%s2565_s28 + $0x160] sm:$0xff]  ;;  %v321_v32 = vld [vmem:[%s2565_s28 + $0x170] sm:$0xff] }
 0x1ec   : > { %v1106_v35 = vpop.f32.mrf.mxu0 }
 0x1ed   : > { %v1107_v55 = vadd.f32 %v1106_v35, %v2958_v9  ;;  %v1298_v39 = vpop.f32.mrf.mxu3 }
 0x1ee   : > { %v3115_v34 = vadd.f32 %v1298_v39, %v1234_v33  ;;  %v1171_v41 = vpop.f32.mrf.mxu1 }
 0x1ef   : > { %1365 = vmatmul.f32.gmra.mxu0 %v507_v36  ;;  %1495 = vmatmul.f32.gmra.mxu2 %v509_v38  ;;  %v1172_v2 = vadd.f32 %v1171_v41, %v1107_v55  ;;  %v320_v38 = vld [vmem:[%s2565_s28 + $0x168] sm:$0xff]  ;;  %v322_v55 = vld [vmem:[%s2565_s28 + $0x178] sm:$0xff] }
 0x1f1   : > { %1430 = vmatmul.f32.gmra.mxu1 %v508_v42 }
 0x1f2   : > { %1560 = vmatmul.f32.gmra.mxu3 %v510_v44  ;;  %v1236_v45 = vpop.f32.mrf.mxu2 }
 0x1f3   : > { %v1237_v47 = vadd.f32 %v1236_v45, %v1172_v2  ;;  %v335_v2 = vld [vmem:[%s2565_s28 + $0x1e0] sm:$0xff]  ;;  %v337_v45 = vld [vmem:[%s2565_s28 + $0x1f0] sm:$0xff] }
 0x1f4   : > { %v1109_v51 = vpop.f32.mrf.mxu0 }
 0x1f5   : > { %v1110_v9 = vadd.f32 %v1109_v51, %v2969_v28  ;;  %v1301_v53 = vpop.f32.mrf.mxu3 }
 0x1f6   : > { %v3122_v54 = vadd.f32 %v1301_v53, %v1237_v47  ;;  %v1174_v56 = vpop.f32.mrf.mxu1 }
 0x1f7   : > { %1368 = vmatmul.f32.gmra.mxu0 %v523_v14  ;;  %1498 = vmatmul.f32.gmra.mxu2 %v525_v52  ;;  %v1175_v59 = vadd.f32 %v1174_v56, %v1110_v9  ;;  %v336_v52 = vld [vmem:[%s2565_s28 + $0x1e8] sm:$0xff]  ;;  %v338_v9 = vld [vmem:[%s2565_s28 + $0x1f8] sm:$0xff] }
 0x1f9   : > { %1433 = vmatmul.f32.gmra.mxu1 %v524_v57 }
 0x1fa   : > { %1563 = vmatmul.f32.gmra.mxu3 %v526_v58  ;;  %v1239_v60 = vpop.f32.mrf.mxu2 }
 0x1fb   : > { %v1240_v61 = vadd.f32 %v1239_v60, %v1175_v59  ;;  %v351_v59 = vld [vmem:[%s2565_s28 + $0x260] sm:$0xff]  ;;  %v353_v60 = vld [vmem:[%s2565_s28 + $0x270] sm:$0xff] }
 0x1fc   : > { %v1324_v1 = vpop.f32.mrf.mxu0 }
 0x1fd   : > { %v1304_v28 = vpop.f32.mrf.mxu3  ;;  %v1325_v4 = vadd.f32 %v1324_v1, %v2980_v50 }
 0x1fe   : > { %v3129_v6 = vadd.f32 %v1304_v28, %v1240_v61  ;;  %v1389_v31 = vpop.f32.mrf.mxu1  ;;  %v354_v28 = vld [vmem:[%s2565_s28 + $0x278] sm:$0xff] }
 0x1ff   : > { %1583 = vmatmul.f32.vlgmr.msrb.gmra.mxu0 %v287_v19  ;;  %1713 = vmatmul.f32.vlgmr.msrb.gmra.mxu2 %v289_v3  ;;  %v1390_v10 = vadd.f32 %v1389_v31, %v1325_v4  ;;  %v352_v3 = vld [vmem:[%s2565_s28 + $0x268] sm:$0xff] }
 0x201   : > { %1648 = vmatmul.f32.vlgmr.msrb.gmra.mxu1 %v288_v7 }
 0x202   : > { %1778 = vmatmul.f32.vlgmr.msrb.gmra.mxu3 %v290_v8  ;;  %v1454_v11 = vpop.f32.mrf.mxu2 }
 0x203   : > { %v1455_v12 = vadd.f32 %v1454_v11, %v1390_v10  ;;  %v367_v10 = vld [vmem:[%s2565_s28 + $0x2e0] sm:$0xff]  ;;  %v369_v11 = vld [vmem:[%s2565_s28 + $0x2f0] sm:$0xff] }
 0x204   : > { %v1327_v13 = vpop.f32.mrf.mxu0 }
 0x205   : > { %v1328_v50 = vadd.f32 %v1327_v13, %v2991_v5  ;;  %v1519_v18 = vpop.f32.mrf.mxu3 }
 0x206   : > { %v3136_v21 = vadd.f32 %v1519_v18, %v1455_v12  ;;  %v1392_v22 = vpop.f32.mrf.mxu1 }
 0x207   : > { %1586 = vmatmul.f32.gmra.mxu0 %v303_v16  ;;  %1716 = vmatmul.f32.gmra.mxu2 %v305_v17  ;;  %v1393_v25 = vadd.f32 %v1392_v22, %v1328_v50  ;;  %v368_v17 = vld [vmem:[%s2565_s28 + $0x2e8] sm:$0xff]  ;;  %v370_v50 = vld [vmem:[%s2565_s28 + $0x2f8] sm:$0xff] }
 0x209   : > { %1651 = vmatmul.f32.gmra.mxu1 %v304_v23 }
 0x20a   : > { %1781 = vmatmul.f32.gmra.mxu3 %v306_v37  ;;  %v1457_v26 = vpop.f32.mrf.mxu2 }
 0x20b   : > { %v1458_v27 = vadd.f32 %v1457_v26, %v1393_v25  ;;  %v383_v25 = vld [vmem:[%s2565_s28 + $0x360] sm:$0xff]  ;;  %v385_v26 = vld [vmem:[%s2565_s28 + $0x370] sm:$0xff] }
 0x20c   : > { %v1330_v29 = vpop.f32.mrf.mxu0 }
 0x20d   : > { %v1331_v5 = vadd.f32 %v1330_v29, %v3002_v24  ;;  %v1522_v33 = vpop.f32.mrf.mxu3 }
 0x20e   : > { %v3143_v35 = vadd.f32 %v1522_v33, %v1458_v27  ;;  %v1395_v36 = vpop.f32.mrf.mxu1 }
 0x20f   : > { %1589 = vmatmul.f32.gmra.mxu0 %v319_v62  ;;  %1719 = vmatmul.f32.gmra.mxu2 %v321_v32  ;;  %v1396_v39 = vadd.f32 %v1395_v36, %v1331_v5  ;;  %v384_v32 = vld [vmem:[%s2565_s28 + $0x368] sm:$0xff]  ;;  %v386_v5 = vld [vmem:[%s2565_s28 + $0x378] sm:$0xff] }
 0x211   : > { %1654 = vmatmul.f32.gmra.mxu1 %v320_v38 }
 0x212   : > { %1784 = vmatmul.f32.gmra.mxu3 %v322_v55  ;;  %v1460_v41 = vpop.f32.mrf.mxu2 }
 0x213   : > { %v1461_v42 = vadd.f32 %v1460_v41, %v1396_v39  ;;  %v399_v39 = vld [vmem:[%s2565_s28 + $0x3e0] sm:$0xff]  ;;  %v401_v41 = vld [vmem:[%s2565_s28 + $0x3f0] sm:$0xff] }
 0x214   : > { %v1333_v44 = vpop.f32.mrf.mxu0 }
 0x215   : > { %v1334_v24 = vadd.f32 %v1333_v44, %v3013_v43  ;;  %v1525_v47 = vpop.f32.mrf.mxu3 }
 0x216   : > { %v3150_v51 = vadd.f32 %v1525_v47, %v1461_v42  ;;  %v1398_v14 = vpop.f32.mrf.mxu1 }
 0x217   : > { %1592 = vmatmul.f32.gmra.mxu0 %v335_v2  ;;  %1722 = vmatmul.f32.gmra.mxu2 %v337_v45  ;;  %v1399_v53 = vadd.f32 %v1398_v14, %v1334_v24  ;;  %v400_v45 = vld [vmem:[%s2565_s28 + $0x3e8] sm:$0xff]  ;;  %v402_v24 = vld [vmem:[%s2565_s28 + $0x3f8] sm:$0xff] }
 0x219   : > { %1657 = vmatmul.f32.gmra.mxu1 %v336_v52 }
 0x21a   : > { %1787 = vmatmul.f32.gmra.mxu3 %v338_v9  ;;  %v1463_v56 = vpop.f32.mrf.mxu2 }
 0x21b   : > { %v1464_v57 = vadd.f32 %v1463_v56, %v1399_v53  ;;  %v415_v53 = vld [vmem:[%s2565_s28 + $0x460] sm:$0xff]  ;;  %v417_v56 = vld [vmem:[%s2565_s28 + $0x470] sm:$0xff] }
 0x21c   : > { %v1336_v58 = vpop.f32.mrf.mxu0 }
 0x21d   : > { %v1337_v43 = vadd.f32 %v1336_v58, %v3024_v63  ;;  %v1528_v61 = vpop.f32.mrf.mxu3 }
 0x21e   : > { %v3157_v1 = vadd.f32 %v1528_v61, %v1464_v57  ;;  %v1401_v19 = vpop.f32.mrf.mxu1  ;;  %v418_v61 = vld [vmem:[%s2565_s28 + $0x478] sm:$0xff] }
 0x21f   : > { %1595 = vmatmul.f32.gmra.mxu0 %v351_v59  ;;  %1725 = vmatmul.f32.gmra.mxu2 %v353_v60  ;;  %v1402_v4 = vadd.f32 %v1401_v19, %v1337_v43  ;;  %v416_v60 = vld [vmem:[%s2565_s28 + $0x468] sm:$0xff] }
 0x221   : > { %1660 = vmatmul.f32.gmra.mxu1 %v352_v3 }
 0x222   : > { %1790 = vmatmul.f32.gmra.mxu3 %v354_v28  ;;  %v1466_v31 = vpop.f32.mrf.mxu2 }
 0x223   : > { %v1467_v7 = vadd.f32 %v1466_v31, %v1402_v4  ;;  %v431_v4 = vld [vmem:[%s2565_s28 + $0x4e0] sm:$0xff]  ;;  %v433_v31 = vld [vmem:[%s2565_s28 + $0x4f0] sm:$0xff] }
 0x224   : > { %v1339_v8 = vpop.f32.mrf.mxu0 }
 0x225   : > { %v1340_v63 = vadd.f32 %v1339_v8, %v3035_v20  ;;  %v1531_v12 = vpop.f32.mrf.mxu3 }
 0x226   : > { %v3164_v13 = vadd.f32 %v1531_v12, %v1467_v7  ;;  %v1404_v16 = vpop.f32.mrf.mxu1  ;;  %v434_v12 = vld [vmem:[%s2565_s28 + $0x4f8] sm:$0xff] }
 0x227   : > { %1598 = vmatmul.f32.gmra.mxu0 %v367_v10  ;;  %1728 = vmatmul.f32.gmra.mxu2 %v369_v11  ;;  %v1405_v18 = vadd.f32 %v1404_v16, %v1340_v63  ;;  %v432_v11 = vld [vmem:[%s2565_s28 + $0x4e8] sm:$0xff] }
 0x229   : > { %1663 = vmatmul.f32.gmra.mxu1 %v368_v17 }
 0x22a   : > { %1793 = vmatmul.f32.gmra.mxu3 %v370_v50  ;;  %v1469_v22 = vpop.f32.mrf.mxu2 }
 0x22b   : > { %v1470_v23 = vadd.f32 %v1469_v22, %v1405_v18  ;;  %v447_v18 = vld [vmem:[%s2565_s28 + $0x560] sm:$0xff]  ;;  %v449_v22 = vld [vmem:[%s2565_s28 + $0x570] sm:$0xff] }
 0x22c   : > { %v1342_v37 = vpop.f32.mrf.mxu0 }
 0x22d   : > { %v1343_v20 = vadd.f32 %v1342_v37, %v3046_v40  ;;  %v1534_v27 = vpop.f32.mrf.mxu3 }
 0x22e   : > { %v3171_v29 = vadd.f32 %v1534_v27, %v1470_v23  ;;  %v1407_v62 = vpop.f32.mrf.mxu1  ;;  %v450_v27 = vld [vmem:[%s2565_s28 + $0x578] sm:$0xff] }
 0x22f   : > { %1601 = vmatmul.f32.gmra.mxu0 %v383_v25  ;;  %1731 = vmatmul.f32.gmra.mxu2 %v385_v26  ;;  %v1408_v33 = vadd.f32 %v1407_v62, %v1343_v20  ;;  %v448_v26 = vld [vmem:[%s2565_s28 + $0x568] sm:$0xff] }
 0x231   : > { %1666 = vmatmul.f32.gmra.mxu1 %v384_v32 }
 0x232   : > { %1796 = vmatmul.f32.gmra.mxu3 %v386_v5  ;;  %v1472_v36 = vpop.f32.mrf.mxu2 }
 0x233   : > { %v1473_v38 = vadd.f32 %v1472_v36, %v1408_v33  ;;  %v463_v33 = vld [vmem:[%s2565_s28 + $0x5e0] sm:$0xff]  ;;  %v465_v36 = vld [vmem:[%s2565_s28 + $0x5f0] sm:$0xff] }
 0x234   : > { %v1345_v55 = vpop.f32.mrf.mxu0 }
 0x235   : > { %v1346_v40 = vadd.f32 %v1345_v55, %v3057_v49  ;;  %v1537_v42 = vpop.f32.mrf.mxu3 }
 0x236   : > { %v3178_v44 = vadd.f32 %v1537_v42, %v1473_v38  ;;  %v1410_v2 = vpop.f32.mrf.mxu1  ;;  %v466_v42 = vld [vmem:[%s2565_s28 + $0x5f8] sm:$0xff] }
 0x237   : > { %1604 = vmatmul.f32.gmra.mxu0 %v399_v39  ;;  %1734 = vmatmul.f32.gmra.mxu2 %v401_v41  ;;  %v1411_v47 = vadd.f32 %v1410_v2, %v1346_v40  ;;  %v464_v41 = vld [vmem:[%s2565_s28 + $0x5e8] sm:$0xff] }
 0x239   : > { %1669 = vmatmul.f32.gmra.mxu1 %v400_v45 }
 0x23a   : > { %1799 = vmatmul.f32.gmra.mxu3 %v402_v24  ;;  %v1475_v14 = vpop.f32.mrf.mxu2 }
 0x23b   : > { %v1476_v52 = vadd.f32 %v1475_v14, %v1411_v47  ;;  %v479_v47 = vld [vmem:[%s2565_s28 + $0x660] sm:$0xff]  ;;  %v481_v14 = vld [vmem:[%s2565_s28 + $0x670] sm:$0xff] }
 0x23c   : > { %v1348_v9 = vpop.f32.mrf.mxu0 }
 0x23d   : > { %v1349_v49 = vadd.f32 %v1348_v9, %v3068_v0  ;;  %v1540_v57 = vpop.f32.mrf.mxu3 }
 0x23e   : > { %v3185_v58 = vadd.f32 %v1540_v57, %v1476_v52  ;;  %v1413_v59 = vpop.f32.mrf.mxu1  ;;  %v482_v57 = vld [vmem:[%s2565_s28 + $0x678] sm:$0xff] }
 0x23f   : > { %v1414_v43 = vadd.f32 %v1413_v59, %v1349_v49  ;;  %1607 = vmatmul.f32.gmra.mxu0 %v415_v53  ;;  %1737 = vmatmul.f32.gmra.mxu2 %v417_v56  ;;  %v480_v56 = vld [vmem:[%s2565_s28 + $0x668] sm:$0xff] }
 0x241   : > { %1672 = vmatmul.f32.gmra.mxu1 %v416_v60 }
 0x242   : > { %1802 = vmatmul.f32.gmra.mxu3 %v418_v61  ;;  %v1478_v19 = vpop.f32.mrf.mxu2  ;;  %v495_v61 = vld [vmem:[%s2565_s28 + $0x6e0] sm:$0xff] }
 0x243   : > { %v1479_v3 = vadd.f32 %v1478_v19, %v1414_v43  ;;  %v497_v19 = vld [vmem:[%s2565_s28 + $0x6f0] sm:$0xff] }
 0x244   : > { %v1351_v28 = vpop.f32.mrf.mxu0 }
 0x245   : > { %v1352_v0 = vadd.f32 %v1351_v28, %v3079_v15  ;;  %v1543_v7 = vpop.f32.mrf.mxu3 }
 0x246   : > { %v3192_v8 = vadd.f32 %v1543_v7, %v1479_v3  ;;  %v1416_v10 = vpop.f32.mrf.mxu1  ;;  %v498_v7 = vld [vmem:[%s2565_s28 + $0x6f8] sm:$0xff] }
 0x247   : > { %v1417_v63 = vadd.f32 %v1416_v10, %v1352_v0  ;;  %1610 = vmatmul.f32.gmra.mxu0 %v431_v4  ;;  %1740 = vmatmul.f32.gmra.mxu2 %v433_v31  ;;  %v496_v31 = vld [vmem:[%s2565_s28 + $0x6e8] sm:$0xff] }
 0x249   : > { %1675 = vmatmul.f32.gmra.mxu1 %v432_v11 }
 0x24a   : > { %1805 = vmatmul.f32.gmra.mxu3 %v434_v12  ;;  %v1481_v16 = vpop.f32.mrf.mxu2  ;;  %v511_v12 = vld [vmem:[%s2565_s28 + $0x760] sm:$0xff] }
 0x24b   : > { %v1482_v17 = vadd.f32 %v1481_v16, %v1417_v63  ;;  %v513_v16 = vld [vmem:[%s2565_s28 + $0x770] sm:$0xff] }
 0x24c   : > { %v1354_v50 = vpop.f32.mrf.mxu0 }
 0x24d   : > { %v1355_v15 = vadd.f32 %v1354_v50, %v3090_v30  ;;  %v1546_v23 = vpop.f32.mrf.mxu3 }
 0x24e   : > { %v3199_v37 = vadd.f32 %v1546_v23, %v1482_v17  ;;  %v1419_v25 = vpop.f32.mrf.mxu1  ;;  %v514_v23 = vld [vmem:[%s2565_s28 + $0x778] sm:$0xff] }
 0x24f   : > { %v1420_v20 = vadd.f32 %v1419_v25, %v1355_v15  ;;  %1613 = vmatmul.f32.gmra.mxu0 %v447_v18  ;;  %1743 = vmatmul.f32.gmra.mxu2 %v449_v22  ;;  %v512_v22 = vld [vmem:[%s2565_s28 + $0x768] sm:$0xff] }
 0x251   : > { %1678 = vmatmul.f32.gmra.mxu1 %v448_v26 }
 0x252   : > { %1808 = vmatmul.f32.gmra.mxu3 %v450_v27  ;;  %v1484_v62 = vpop.f32.mrf.mxu2  ;;  %v527_v27 = vld [vmem:[%s2565_s28 + $0x7e0] sm:$0xff] }
 0x253   : > { %v1485_v32 = vadd.f32 %v1484_v62, %v1420_v20  ;;  %v529_v62 = vld [vmem:[%s2565_s28 + $0x7f0] sm:$0xff] }
 0x254   : > { %v1357_v5 = vpop.f32.mrf.mxu0 }
 0x255   : > { %v1358_v30 = vadd.f32 %v1357_v5, %v3101_v46  ;;  %v1549_v38 = vpop.f32.mrf.mxu3 }
 0x256   : > { %v3206_v55 = vadd.f32 %v1549_v38, %v1485_v32  ;;  %v1422_v39 = vpop.f32.mrf.mxu1  ;;  %v530_v38 = vld [vmem:[%s2565_s28 + $0x7f8] sm:$0xff] }
 0x257   : > { %v1423_v40 = vadd.f32 %v1422_v39, %v1358_v30  ;;  %1616 = vmatmul.f32.gmra.mxu0 %v463_v33  ;;  %1746 = vmatmul.f32.gmra.mxu2 %v465_v36  ;;  %v528_v36 = vld [vmem:[%s2565_s28 + $0x7e8] sm:$0xff]  ;;  %s1875_s28 = sshll.u32 %s1872_s19, 4  ;;  %s1876_s28 = int_to_ptr.hbm [resolvable:$true] %s1875_s28 }
 0x258   : > { %s2230_s3 = sshra.s32 %s1876_s28, 4  ;;  %s2231_s3 = int_to_ptr.hbm [resolvable:$true] %s2230_s3 }
 0x259   : > { %1681 = vmatmul.f32.gmra.mxu1 %v464_v41  ;;  %s2232_s21 = scalar_lea.hbm %s2231_s3, 128  ;;  %p2237_p7 = scmp.lt.s32.totalorder %s2231_s3, %s3385_s23 }
 0x25a   : > { %1811 = vmatmul.f32.gmra.mxu3 %v466_v42  ;;  %v1487_v2 = vpop.f32.mrf.mxu2  ;;  %p2233_p1 = scmp.ne.s32.totalorder %s2231_s3, %s2232_s21  ;;  %p2238_p8 = scmp.lt.s32.totalorder %s2236_s30, %s2232_s21 }
 0x25b   : > { %v1488_v45 = vadd.f32 %v1487_v2, %v1423_v40 }
 0x25c   : > { %v1360_v24 = vpop.f32.mrf.mxu0  ;;  %p2234_p3 = pnand %p2233_p1, %p2543_p6  ;;  %p2239_p9 = por %p2238_p8, %p2237_p7 }
 0x25d   : > { %v1361_v46 = vadd.f32 %v1360_v24, %v3108_v48  ;;  %v1552_v52 = vpop.f32.mrf.mxu3 }
 0x25e   : > { %v3213_v9 = vadd.f32 %v1552_v52, %v1488_v45  ;;  %v1425_v53 = vpop.f32.mrf.mxu1  ;;  %p2235_p4 = pneg %p2234_p3 }
 0x25f   : > { %v1426_v49 = vadd.f32 %v1425_v53, %v1361_v46  ;;  %1619 = vmatmul.f32.gmra.mxu0 %v479_v47  ;;  %1749 = vmatmul.f32.gmra.mxu2 %v481_v14  ;;  %v259_v53 = vld [vmem:[%s2581_s12] sm:$0xff] }
 0x260   : > { %p2240_p10 = pnand %p2239_p9, %p2235_p4 }
 0x261   : > { %1684 = vmatmul.f32.gmra.mxu1 %v480_v56 }
 0x262   : > { %1814 = vmatmul.f32.gmra.mxu3 %v482_v57  ;;  %v1490_v59 = vpop.f32.mrf.mxu2 }
 0x263   : > { %v1491_v60 = vadd.f32 %v1490_v59, %v1426_v49 }
 0x264   : > { %v1363_v43 = vpop.f32.mrf.mxu0 }
 0x265   : > { %v1364_v48 = vadd.f32 %v1363_v43, %v3115_v34  ;;  %v1555_v3 = vpop.f32.mrf.mxu3 }
 0x266   : > { %v3220_v28 = vadd.f32 %v1555_v3, %v1491_v60  ;;  %v1428_v4 = vpop.f32.mrf.mxu1 }
 0x267   : > { %v1429_v0 = vadd.f32 %v1428_v4, %v1364_v48  ;;  %1622 = vmatmul.f32.gmra.mxu0 %v495_v61  ;;  %1752 = vmatmul.f32.gmra.mxu2 %v497_v19  ;;  %v260_v48 = vld [vmem:[%s2581_s12 + $0x8] sm:$0xff] }
 0x269   : > { %1687 = vmatmul.f32.gmra.mxu1 %v496_v31 }
 0x26a   : > { %1817 = vmatmul.f32.gmra.mxu3 %v498_v7  ;;  %v1493_v10 = vpop.f32.mrf.mxu2 }
 0x26b   : > { %v1494_v11 = vadd.f32 %v1493_v10, %v1429_v0 }
 0x26c   : > { %v1366_v63 = vpop.f32.mrf.mxu0 }
 0x26d   : > { %v1367_v34 = vadd.f32 %v1366_v63, %v3122_v54  ;;  %v1558_v17 = vpop.f32.mrf.mxu3 }
 0x26e   : > { %v3227_v50 = vadd.f32 %v1558_v17, %v1494_v11  ;;  %v1431_v18 = vpop.f32.mrf.mxu1 }
 0x26f   : > { %v1432_v15 = vadd.f32 %v1431_v18, %v1367_v34  ;;  %1625 = vmatmul.f32.gmra.mxu0 %v511_v12  ;;  %1755 = vmatmul.f32.gmra.mxu2 %v513_v16  ;;  %v261_v12 = vld [vmem:[%s2581_s12 + $0x10] sm:$0xff] }
 0x271   : > { %1690 = vmatmul.f32.gmra.mxu1 %v512_v22 }
 0x272   : > { %1820 = vmatmul.f32.gmra.mxu3 %v514_v23  ;;  %v1496_v25 = vpop.f32.mrf.mxu2 }
 0x273   : > { %v1497_v26 = vadd.f32 %v1496_v25, %v1432_v15 }
 0x274   : > { %v1369_v20 = vpop.f32.mrf.mxu0 }
 0x275   : > { %v1370_v54 = vadd.f32 %v1369_v20, %v3129_v6  ;;  %v1561_v32 = vpop.f32.mrf.mxu3 }
 0x276   : > { %v3234_v5 = vadd.f32 %v1561_v32, %v1497_v26  ;;  %v1434_v33 = vpop.f32.mrf.mxu1  ;;  %v262_v26 = vld [vmem:[%s2581_s12 + $0x18] sm:$0xff] }
 0x277   : > { %v1435_v30 = vadd.f32 %v1434_v33, %v1370_v54  ;;  %1628 = vmatmul.f32.gmra.mxu0 %v527_v27  ;;  %1758 = vmatmul.f32.gmra.mxu2 %v529_v62 }
 0x279   : > { %1693 = vmatmul.f32.gmra.mxu1 %v528_v36 }
 0x27a   : > { %1823 = vmatmul.f32.gmra.mxu3 %v530_v38  ;;  %v1499_v39 = vpop.f32.mrf.mxu2  ;;  %v263_v38 = vld [vmem:[%s2581_s12 + $0x20] sm:$0xff] }
 0x27b   : > { %v1500_v41 = vadd.f32 %v1499_v39, %v1435_v30 }
 0x27c   : > { %v1584_v40 = vpop.f32.mrf.mxu0 }
 0x27d   : > { %v1564_v42 = vpop.f32.mrf.mxu3  ;;  %v1585_v2 = vadd.f32 %v1584_v40, %v3136_v21 }
 0x27e   : > { %v3239_v6 = vadd.f32 %v1564_v42, %v1500_v41  ;;  %v1649_v45 = vpop.f32.mrf.mxu1 }
 0x27f   : > { %v1650_v24 = vadd.f32 %v1649_v45, %v1585_v2 }
 0x282   : > { %v1714_v47 = vpop.f32.mrf.mxu2 }
 0x283   : > { %v1715_v14 = vadd.f32 %v1714_v47, %v1650_v24 }
 0x284   : > { %v1587_v46 = vpop.f32.mrf.mxu0 }
 0x285   : > { %v1588_v52 = vadd.f32 %v1587_v46, %v3143_v35  ;;  %v1779_v56 = vpop.f32.mrf.mxu3 }
 0x286   : > { %v1780_v49 = vadd.f32 %v1779_v56, %v1715_v14  ;;  %v1652_v57 = vpop.f32.mrf.mxu1  ;;  %v264_v14 = vld [vmem:[%s2581_s12 + $0x28] sm:$0xff] }
 0x287   : > { %v1653_v60 = vadd.f32 %v1652_v57, %v1588_v52 }
 0x288   : > { %v1827_v59 = vadd.f32 %v1780_v49, %v259_v53 }
 0x28a   : > { %1843 = vst [vmem:[%s2581_s12] sm:$0xff] %v1827_v59  ;;  %v1717_v21 = vpop.f32.mrf.mxu2 }
 0x28b   : > { %v1718_v43 = vadd.f32 %v1717_v21, %v1653_v60  ;;  %v265_v21 = vld [vmem:[%s2581_s12 + $0x30] sm:$0xff] }
 0x28c   : > { %v1590_v61 = vpop.f32.mrf.mxu0 }
 0x28d   : > { %v1591_v19 = vadd.f32 %v1590_v61, %v3150_v51  ;;  %v1782_v3 = vpop.f32.mrf.mxu3 }
 0x28e   : > { %v1783_v4 = vadd.f32 %v1782_v3, %v1718_v43  ;;  %v1655_v31 = vpop.f32.mrf.mxu1 }
 0x28f   : > { %v1656_v0 = vadd.f32 %v1655_v31, %v1591_v19 }
 0x290   : > { %v1828_v35 = vadd.f32 %v1783_v4, %v260_v48 }
 0x292   : > { %1844 = vst [vmem:[%s2581_s12 + $0x8] sm:$0xff] %v1828_v35  ;;  %v1720_v7 = vpop.f32.mrf.mxu2 }
 0x293   : > { %v1721_v10 = vadd.f32 %v1720_v7, %v1656_v0  ;;  %v266_v0 = vld [vmem:[%s2581_s12 + $0x38] sm:$0xff] }
 0x294   : > { %v1593_v11 = vpop.f32.mrf.mxu0 }
 0x295   : > { %v1594_v63 = vadd.f32 %v1593_v11, %v3157_v1  ;;  %v1785_v16 = vpop.f32.mrf.mxu3 }
 0x296   : > { %v1786_v34 = vadd.f32 %v1785_v16, %v1721_v10  ;;  %v1658_v17 = vpop.f32.mrf.mxu1 }
 0x297   : > { %v1659_v18 = vadd.f32 %v1658_v17, %v1594_v63 }
 0x298   : > { %v1829_v51 = vadd.f32 %v1786_v34, %v261_v12 }
 0x29a   : > { %1845 = vst [vmem:[%s2581_s12 + $0x10] sm:$0xff] %v1829_v51  ;;  %v1723_v22 = vpop.f32.mrf.mxu2  ;;  %v267_v51 = vld [vmem:[%s2581_s12 + $0x40] sm:$0xff] }
 0x29b   : > { %v1724_v15 = vadd.f32 %v1723_v22, %v1659_v18 }
 0x29c   : > { %v1596_v23 = vpop.f32.mrf.mxu0 }
 0x29d   : > { %v1597_v25 = vadd.f32 %v1596_v23, %v3164_v13  ;;  %v1788_v20 = vpop.f32.mrf.mxu3 }
 0x29e   : > { %v1789_v27 = vadd.f32 %v1788_v20, %v1724_v15  ;;  %v1661_v62 = vpop.f32.mrf.mxu1 }
 0x29f   : > { %v1662_v54 = vadd.f32 %v1661_v62, %v1597_v25  ;;  %v268_v62 = vld [vmem:[%s2581_s12 + $0x48] sm:$0xff] }
 0x2a0   : > { %v1830_v1 = vadd.f32 %v1789_v27, %v262_v26 }
 0x2a2   : > { %1846 = vst [vmem:[%s2581_s12 + $0x18] sm:$0xff] %v1830_v1  ;;  %v1726_v32 = vpop.f32.mrf.mxu2 }
 0x2a3   : > { %v1727_v33 = vadd.f32 %v1726_v32, %v1662_v54 }
 0x2a4   : > { %v1599_v36 = vpop.f32.mrf.mxu0 }
 0x2a5   : > { %v1600_v30 = vadd.f32 %v1599_v36, %v3171_v29  ;;  %v1791_v39 = vpop.f32.mrf.mxu3 }
 0x2a6   : > { %v1792_v41 = vadd.f32 %v1791_v39, %v1727_v33  ;;  %v1664_v40 = vpop.f32.mrf.mxu1 }
 0x2a7   : > { %v1665_v42 = vadd.f32 %v1664_v40, %v1600_v30 }
 0x2a8   : > { %v1831_v13 = vadd.f32 %v1792_v41, %v263_v38  ;;  %v269_v41 = vld [vmem:[%s2581_s12 + $0x50] sm:$0xff] }
 0x2aa   : > { %1847 = vst [vmem:[%s2581_s12 + $0x20] sm:$0xff] %v1831_v13  ;;  %v1729_v2 = vpop.f32.mrf.mxu2 }
 0x2ab   : > { %v1730_v45 = vadd.f32 %v1729_v2, %v1665_v42 }
 0x2ac   : > { %v1602_v24 = vpop.f32.mrf.mxu0 }
 0x2ad   : > { %v1603_v47 = vadd.f32 %v1602_v24, %v3178_v44  ;;  %v1794_v46 = vpop.f32.mrf.mxu3 }
 0x2ae   : > { %v1795_v52 = vadd.f32 %v1794_v46, %v1730_v45  ;;  %v1667_v53 = vpop.f32.mrf.mxu1  ;;  %v270_v46 = vld [vmem:[%s2581_s12 + $0x58] sm:$0xff] }
 0x2af   : > { %v1668_v56 = vadd.f32 %v1667_v53, %v1603_v47 }
 0x2b0   : > { %v1832_v29 = vadd.f32 %v1795_v52, %v264_v14 }
 0x2b2   : > { %1848 = vst [vmem:[%s2581_s12 + $0x28] sm:$0xff] %v1832_v29  ;;  %v1732_v49 = vpop.f32.mrf.mxu2 }
 0x2b3   : > { %v1733_v57 = vadd.f32 %v1732_v49, %v1668_v56 }
 0x2b4   : > { %v1605_v59 = vpop.f32.mrf.mxu0 }
 0x2b5   : > { %v1606_v60 = vadd.f32 %v1605_v59, %v3185_v58  ;;  %v1797_v43 = vpop.f32.mrf.mxu3 }
 0x2b6   : > { %v1798_v61 = vadd.f32 %v1797_v43, %v1733_v57  ;;  %v1670_v19 = vpop.f32.mrf.mxu1 }
 0x2b7   : > { %v1671_v48 = vadd.f32 %v1670_v19, %v1606_v60 }
 0x2b8   : > { %v1833_v44 = vadd.f32 %v1798_v61, %v265_v21  ;;  %v271_v21 = vld [vmem:[%s2581_s12 + $0x60] sm:$0xff] }
 0x2ba   : > { %1849 = vst [vmem:[%s2581_s12 + $0x30] sm:$0xff] %v1833_v44  ;;  %v1735_v3 = vpop.f32.mrf.mxu2 }
 0x2bb   : > { %v1736_v4 = vadd.f32 %v1735_v3, %v1671_v48 }
 0x2bc   : > { %v1608_v31 = vpop.f32.mrf.mxu0 }
 0x2bd   : > { %v1609_v35 = vadd.f32 %v1608_v31, %v3192_v8  ;;  %v1800_v7 = vpop.f32.mrf.mxu3 }
 0x2be   : > { %v1801_v10 = vadd.f32 %v1800_v7, %v1736_v4  ;;  %v1673_v11 = vpop.f32.mrf.mxu1 }
 0x2bf   : > { %v1674_v63 = vadd.f32 %v1673_v11, %v1609_v35  ;;  %v272_v35 = vld [vmem:[%s2581_s12 + $0x68] sm:$0xff] }
 0x2c0   : > { %v1834_v58 = vadd.f32 %v1801_v10, %v266_v0 }
 0x2c2   : > { %1850 = vst [vmem:[%s2581_s12 + $0x38] sm:$0xff] %v1834_v58  ;;  %v1738_v12 = vpop.f32.mrf.mxu2 }
 0x2c3   : > { %v1739_v16 = vadd.f32 %v1738_v12, %v1674_v63 }
 0x2c4   : > { %v1611_v34 = vpop.f32.mrf.mxu0 }
 0x2c5   : > { %v1612_v17 = vadd.f32 %v1611_v34, %v3199_v37  ;;  %v1803_v18 = vpop.f32.mrf.mxu3  ;;  %v273_v34 = vld [vmem:[%s2581_s12 + $0x70] sm:$0xff] }
 0x2c6   : > { %v1804_v22 = vadd.f32 %v1803_v18, %v1739_v16  ;;  %v1676_v15 = vpop.f32.mrf.mxu1 }
 0x2c7   : > { %v1677_v23 = vadd.f32 %v1676_v15, %v1612_v17 }
 0x2c8   : > { %v1835_v8 = vadd.f32 %v1804_v22, %v267_v51 }
 0x2ca   : > { %1851 = vst [vmem:[%s2581_s12 + $0x40] sm:$0xff] %v1835_v8  ;;  %v1741_v25 = vpop.f32.mrf.mxu2 }
 0x2cb   : > { %v1742_v26 = vadd.f32 %v1741_v25, %v1677_v23 }
 0x2cc   : > { %v1614_v20 = vpop.f32.mrf.mxu0 }
 0x2cd   : > { %v1615_v27 = vadd.f32 %v1614_v20, %v3206_v55  ;;  %v1806_v1 = vpop.f32.mrf.mxu3 }
 0x2ce   : > { %v1807_v54 = vadd.f32 %v1806_v1, %v1742_v26  ;;  %v1679_v32 = vpop.f32.mrf.mxu1 }
 0x2cf   : > { %v1680_v33 = vadd.f32 %v1679_v32, %v1615_v27 }
 0x2d0   : > { %v1836_v37 = vadd.f32 %v1807_v54, %v268_v62 }
 0x2d2   : > { %1852 = vst [vmem:[%s2581_s12 + $0x48] sm:$0xff] %v1836_v37  ;;  %v1744_v36 = vpop.f32.mrf.mxu2 }
 0x2d3   : > { %v1745_v30 = vadd.f32 %v1744_v36, %v1680_v33 }
 0x2d4   : > { %v1617_v38 = vpop.f32.mrf.mxu0 }
 0x2d5   : > { %v1618_v39 = vadd.f32 %v1617_v38, %v3213_v9  ;;  %v1809_v40 = vpop.f32.mrf.mxu3 }
 0x2d6   : > { %v1810_v13 = vadd.f32 %v1809_v40, %v1745_v30  ;;  %v1682_v42 = vpop.f32.mrf.mxu1 }
 0x2d7   : > { %v1683_v2 = vadd.f32 %v1682_v42, %v1618_v39 }
 0x2d8   : > { %v1837_v55 = vadd.f32 %v1810_v13, %v269_v41 }
 0x2da   : > { %1853 = vst [vmem:[%s2581_s12 + $0x50] sm:$0xff] %v1837_v55  ;;  %v1747_v45 = vpop.f32.mrf.mxu2 }
 0x2db   : > { %v1748_v24 = vadd.f32 %v1747_v45, %v1683_v2 }
 0x2dc   : > { %v1620_v47 = vpop.f32.mrf.mxu0 }
 0x2dd   : > { %v1621_v14 = vadd.f32 %v1620_v47, %v3220_v28  ;;  %v1812_v52 = vpop.f32.mrf.mxu3 }
 0x2de   : > { %v1813_v53 = vadd.f32 %v1812_v52, %v1748_v24  ;;  %v1685_v29 = vpop.f32.mrf.mxu1 }
 0x2df   : > { %v1686_v56 = vadd.f32 %v1685_v29, %v1621_v14 }
 0x2e0   : > { %v1838_v9 = vadd.f32 %v1813_v53, %v270_v46 }
 0x2e2   : > { %1854 = vst [vmem:[%s2581_s12 + $0x58] sm:$0xff] %v1838_v9  ;;  %v1750_v49 = vpop.f32.mrf.mxu2 }
 0x2e3   : > { %v1751_v57 = vadd.f32 %v1750_v49, %v1686_v56 }
 0x2e4   : > { %v1623_v59 = vpop.f32.mrf.mxu0 }
 0x2e5   : > { %v1624_v60 = vadd.f32 %v1623_v59, %v3227_v50  ;;  %v1815_v43 = vpop.f32.mrf.mxu3 }
 0x2e6   : > { %v1816_v61 = vadd.f32 %v1815_v43, %v1751_v57  ;;  %v1688_v19 = vpop.f32.mrf.mxu1 }
 0x2e7   : > { %v1689_v44 = vadd.f32 %v1688_v19, %v1624_v60 }
 0x2e8   : > { %v1839_v28 = vadd.f32 %v1816_v61, %v271_v21 }
 0x2ea   : > { %1855 = vst [vmem:[%s2581_s12 + $0x60] sm:$0xff] %v1839_v28  ;;  %v1753_v48 = vpop.f32.mrf.mxu2 }
 0x2eb   : > { %v1754_v3 = vadd.f32 %v1753_v48, %v1689_v44 }
 0x2ec   : > { %v1626_v4 = vpop.f32.mrf.mxu0 }
 0x2ed   : > { %v1627_v31 = vadd.f32 %v1626_v4, %v3234_v5  ;;  %v1818_v0 = vpop.f32.mrf.mxu3 }
 0x2ee   : > { %v1819_v7 = vadd.f32 %v1818_v0, %v1754_v3  ;;  %v1691_v10 = vpop.f32.mrf.mxu1 }
 0x2ef   : > { %v1692_v11 = vadd.f32 %v1691_v10, %v1627_v31 }
 0x2f0   : > { %v1840_v50 = vadd.f32 %v1819_v7, %v272_v35 }
 0x2f2   : > { %1856 = vst [vmem:[%s2581_s12 + $0x68] sm:$0xff] %v1840_v50  ;;  %v1756_v58 = vpop.f32.mrf.mxu2 }
 0x2f3   : > { %v1757_v63 = vadd.f32 %v1756_v58, %v1692_v11 }
 0x2f4   : > { %v1629_v12 = vpop.f32.mrf.mxu0 }
 0x2f5   : > { %v1630_v16 = vadd.f32 %v1629_v12, %v3239_v6  ;;  %v1821_v17 = vpop.f32.mrf.mxu3  ;;  %v274_v6 = vld [vmem:[%s2581_s12 + $0x78] sm:$0xff] }
 0x2f6   : > { %v1822_v51 = vadd.f32 %v1821_v17, %v1757_v63  ;;  %v1694_v5 = vpop.f32.mrf.mxu1 }
 0x2f7   : > { %v1695_v22 = vadd.f32 %v1694_v5, %v1630_v16 }
 0x2f8   : > { %v1841_v18 = vadd.f32 %v1822_v51, %v273_v34 }
 0x2fa   : > { %1857 = vst [vmem:[%s2581_s12 + $0x70] sm:$0xff] %v1841_v18  ;;  %v1759_v15 = vpop.f32.mrf.mxu2 }
 0x2fb   : > { %v1760_v8 = vadd.f32 %v1759_v15, %v1695_v22 }
 0x2fd   : > { %v1824_v23 = vpop.f32.mrf.mxu3 }
 0x2fe   : > { %v1825_v25 = vadd.f32 %v1824_v23, %v1760_v8 }
 0x300   : > { %v1842_v26 = vadd.f32 %v1825_v25, %v274_v6 }
 0x302   : > { %1858 = vst [vmem:[%s2581_s12 + $0x78] sm:$0xff] %v1842_v26 }
 0x303   : > { %2243 = shalt.err (!%p2240_p10)
}
 0x304   : > { %s2373_s4 = smov 128   ;;  %s2374_s12 = smov 8  }
 0x305   : > { %2022 = dma.vmem_to_hbm [thread:$0]  (%p2543_p6), %s1874_s27, 2048, %s1876_s28, %s1860_s0, %s2373_s4, %s2373_s4, %s2374_s12  }
 0x306 PF: > { %p2036_p5 = scmp.ge.s32.totalorder %s2366_s22, 2  ;;  %s1890_s7 = sand.u32 1, %s2314_s9  }
 0x307   : > { %s1891_s8 = scalar_lea.sflag [#allocation4], %s1890_s7 }
 0x308   : > { %p2032_p11 = pnand %p2036_p5, %p2548_p0 }
 0x30a   : > { %p2033_p2 = pneg %p2032_p11 }
 0x30c   : > { %2309 = dma.done.wait (%p2033_p2), %s1891_s8, 2048  }
 0x30d   : > { %2311 = vsyncadd (%p2033_p2), %s1891_s8, 4294965248  ;;  %s21_s22 = sadd.s32 1, %s2366_s22   ;;  %s3387_s26 = sld [smem:[#allocation13_spill]] }
 0x30e   : > { %p3310_p13 = scmp.ge.s32.totalorder %s21_s22, 6   ;;  %s3388_s27 = sld [smem:[#allocation14_spill]] }
 0x30f   : > { %s3389_s21 = sld [smem:[#allocation15_spill]]  ;;  %s3391_s9 = smov %s2318_s10 }
 0x310   : > { %s3392_s10 = smov %s2322_s11  ;;  %s3393_s11 = smov %s2490_s5 }
 0x311   : > { %s3394_s12 = smov %s2330_s13  ;;  %s3395_s13 = smov %s2334_s14 }
 0x312   : > { %s3396_s14 = smov %s2527_s2  ;;  %s3397_s15 = smov %s2342_s16 }
 0x313   : > { %s3398_s16 = smov %s2346_s17  ;;  %s3399_s17 = smov %s2493_s6 }
 0x314   : > { %s3400_s18 = smov %s2358_s20  ;;  %s3401_s19 = smov %s3387_s26 }
 0x315   : > { %s3402_s20 = smov %s3388_s27  ;;  %20 = sbr.rel (!%p3310_p13) target bundleno = 15 (0xf), region = 90 }
 0x31a   :  { %1897 = vsyncpa [#allocation3], 1 }
 0x31b   :  { %1899 = vsyncpa [#allocation3 + $0x1], 1 }
 0x31c   :  { %1900 = vsyncpa [#allocation6], 1 }
 0x31d   :  { %1902 = vsyncpa [#allocation6 + $0x1], 1 }
 0x31e   :  { %1903 = vsyncpa [#allocation4], 1 }
 0x31f   :  { %1905 = vsyncpa [#allocation4 + $0x1], 1 }

</bundles_post_ra>
